<compile_context>
chip_gen: v7x
topology: tpu7x:2x2x1
jax: 0.10.0
libtpu: 0.0.40
codegen_flags: <defaults>
</compile_context>

<pallas_src>
import functools

import jax
import jax.numpy as jnp
from jax import lax
from jax.experimental import pallas as pl
from jax.experimental.pallas import tpu as pltpu


def _round_up(n, m):
    return ((n + m - 1) // m) * m


def _pick_vmem_limit_bytes():
    """Per-generation scoped-VMEM limit (v5e 16/128, v6e 32/128, v7x 32/64 MiB defaults)."""
    try:
        kind = jax.devices()[0].device_kind.lower()
    except Exception:  # pragma: no cover - defensive; fall through to the safe default
        kind = ""
    if "v7" in kind:
        return 48 * 1024 * 1024     # leave double-buffer headroom under 64 MiB physical
    if "v6" in kind:
        return 96 * 1024 * 1024     # allow big streamed seq-chunks on 128 MiB physical
    return 32 * 1024 * 1024         # v5e & fallback


def _gru_classifier_kernel(x_ref,      # (Sc, Bb, Ip)   mxu_dtype  (seq-chunk of x, seq-major)
                           w_ih_ref,   # (Ip, 3Hp)      mxu_dtype  gate order [r|z|n], gate-padded
                           w_hh_ref,   # (Hp, 3Hp)      mxu_dtype
                           b_ih_ref,   # (1, 3Hp)       f32   (b_ih with r/z parts of b_hh folded in)
                           b_hhn_ref,  # (1, Hp)        f32   (n-gate hidden bias only)
                           w_fc_ref,   # (Hp, Cp)       mxu_dtype
                           b_fc_ref,   # (1, Cp)        f32
                           out_ref,    # (Bb, Cp)       f32
                           h_ref,      # (Bb, Hp)       f32 VMEM scratch, carried across seq chunks
                           *, hidden_padded, chunk_seq, num_classes, mxu_dtype):
    Hp = hidden_padded
    Sc = chunk_seq
    Bb = x_ref.shape[1]
    Ip = x_ref.shape[2]
    s_idx = pl.program_id(1)

    # ---- init hidden state at the first seq chunk (PyTorch default h_0 = 0) ----
    @pl.when(s_idx == 0)
    def _():
        h_ref[...] = jnp.zeros_like(h_ref)

    # ---- Stage 1: input projection for this chunk, ONE big MXU matmul, no VMEM round-trip ----
    # (Sc, Bb, Ip) -> (Sc*Bb, Ip) merges leading dims only; Bb % 8 == 0 and Ip % 128 == 0 so the
    # tiled layout is unchanged (no-copy reshape).
    x_all = x_ref[...].reshape(Sc * Bb, Ip)
    gi_all = jnp.dot(x_all, w_ih_ref[...], preferred_element_type=jnp.float32)
    gi_all = gi_all + b_ih_ref[...]                       # r/z hidden biases already folded in
    gi_all = gi_all.reshape(Sc, Bb, 3 * Hp)

    w_hh = w_hh_ref[...]
    b_hh_n = jnp.broadcast_to(b_hhn_ref[...], (Bb, Hp))   # hoist broadcast out of the loop

    # ---- Stage 2: recurrence; h lives in vregs within the chunk, VMEM scratch across chunks ----
    h = h_ref[...]
    # TODO(synk): hold W_hh resident in the MXU across timesteps via pltpu.matmul_push_rhs /
    # matmul_acc_lhs / matmul_pop so the 3Hp-wide weight push is amortized over Sc steps
    # (jnp.dot re-issues it every step while the LHS is only Bb rows).
    for t in range(Sc):                                   # Sc is small & static -> full unroll
        gi = gi_all[t]                                    # (Bb, 3Hp), static leading-dim slice
        gh = jnp.dot(h.astype(mxu_dtype), w_hh,
                     preferred_element_type=jnp.float32)  # (Bb, 3Hp)
        # Gate slices are 128-lane aligned (each gate block padded to Hp) -> whole-vreg slices.
        i_r, i_z, i_n = gi[:, 0:Hp], gi[:, Hp:2 * Hp], gi[:, 2 * Hp:3 * Hp]
        h_r, h_z, h_n = gh[:, 0:Hp], gh[:, Hp:2 * Hp], gh[:, 2 * Hp:3 * Hp]
        r = jax.nn.sigmoid(i_r + h_r)                     # EUP
        z = jax.nn.sigmoid(i_z + h_z)                     # EUP
        n = jnp.tanh(i_n + r * (h_n + b_hh_n))            # EUP + VPU (b_hn must stay under r*)
        h = n + z * (h - n)                               # == (1-z)*n + z*h, one mul cheaper
    h_ref[...] = h

    # ---- Stage 3: classifier head at the last seq chunk (Linear + exact Softmax) ----
    @pl.when(s_idx == pl.num_programs(1) - 1)
    def _():
        logits = jnp.dot(h.astype(mxu_dtype), w_fc_ref[...],
                         preferred_element_type=jnp.float32) + b_fc_ref[...]   # (Bb, Cp)
        col = lax.broadcasted_iota(jnp.int32, logits.shape, 1)
        logits = jnp.where(col < num_classes, logits, jnp.float32(-1e30))      # mask pad classes
        m = jnp.max(logits, axis=-1, keepdims=True)
        e = jnp.exp(logits - m)
        denom = jnp.sum(e, axis=-1, keepdims=True)
        out_ref[...] = (e / denom).astype(out_ref.dtype)   # exact divide: rows sum to 1


def rnn_classifier_forward(x, params, *, hidden_size, num_classes,
                           mxu_dtype=jnp.float32, max_batch_block=128, max_seq_chunk=64):
    """x: (B, S, I) float32, batch_first like the PyTorch module. Returns (B, num_classes)."""
    B, S, I = x.shape
    H = hidden_size
    Bb = min(_round_up(B, 8), max_batch_block)            # batch block (multiple of 8 sublanes)
    Bp = _round_up(B, Bb)
    Ip = _round_up(I, 128)
    Hp = _round_up(H, 128)
    Cp = _round_up(num_classes, 128)
    # Largest divisor of S that fits the chunk budget (no seq padding: extra steps would be wrong).
    Sc = max(d for d in range(1, min(S, max_seq_chunk) + 1) if S % d == 0)
    nB, nS = Bp // Bb, S // Sc

    # Seq-major + zero-pad batch (sublanes) and input features (lanes), cast MXU operands.
    # TODO(synk): at production S*B, fold this reorder/pad into the BlockSpec index_map (or pad
    # lazily per chunk) to avoid extra HBM passes and the I->Ip lane-padding of x.
    x_sm = jnp.transpose(x, (1, 0, 2))                                    # (S, B, I)
    x_sm = jnp.pad(x_sm, ((0, 0), (0, Bp - B), (0, Ip - I))).astype(mxu_dtype)

    # Pad GRU weights gate-by-gate so each [r|z|n] block starts on a 128-lane boundary.
    def pad_gate_w(w, in_dim, in_pad):                                    # (in, 3H) -> (in_pad, 3Hp)
        w3 = w.reshape(in_dim, 3, H)
        w3 = jnp.pad(w3, ((0, in_pad - in_dim), (0, 0), (0, Hp - H)))
        return w3.reshape(in_pad, 3 * Hp)

    def pad_gate_b(b):                                                    # (1, 3H) -> (1, 3Hp)
        b3 = b.reshape(1, 3, H)
        b3 = jnp.pad(b3, ((0, 0), (0, 0), (0, Hp - H)))
        return b3.reshape(1, 3 * Hp)

    # Fold the r/z components of b_hh into b_ih; only the n-gate hidden bias stays in the loop.
    b_ih_folded = params["b_ih"].at[:, :2 * H].add(params["b_hh"][:, :2 * H])
    b_hh_n = params["b_hh"][:, 2 * H:]                                    # (1, H)

    w_ih_p = pad_gate_w(params["w_ih"], I, Ip).astype(mxu_dtype)
    w_hh_p = pad_gate_w(params["w_hh"], H, Hp).astype(mxu_dtype)
    b_ih_p = pad_gate_b(b_ih_folded).astype(jnp.float32)
    b_hhn_p = jnp.pad(b_hh_n, ((0, 0), (0, Hp - H))).astype(jnp.float32)
    w_fc_p = jnp.pad(params["w_fc"], ((0, Hp - H), (0, Cp - num_classes))).astype(mxu_dtype)
    b_fc_p = jnp.pad(params["b_fc"], ((0, 0), (0, Cp - num_classes))).astype(jnp.float32)

    kernel = functools.partial(_gru_classifier_kernel,
                               hidden_padded=Hp, chunk_seq=Sc,
                               num_classes=num_classes, mxu_dtype=mxu_dtype)

    grid_spec = pltpu.PrefetchScalarGridSpec(
        num_scalar_prefetch=0,
        grid=(nB, nS),
        in_specs=[
            pl.BlockSpec((Sc, Bb, Ip), lambda b, s: (s, b, 0)),   # x streamed over seq chunks
            pl.BlockSpec((Ip, 3 * Hp), lambda b, s: (0, 0)),      # weights stay resident
            pl.BlockSpec((Hp, 3 * Hp), lambda b, s: (0, 0)),
            pl.BlockSpec((1, 3 * Hp), lambda b, s: (0, 0)),
            pl.BlockSpec((1, Hp), lambda b, s: (0, 0)),
            pl.BlockSpec((Hp, Cp), lambda b, s: (0, 0)),
            pl.BlockSpec((1, Cp), lambda b, s: (0, 0)),
        ],
        out_specs=pl.BlockSpec((Bb, Cp), lambda b, s: (b, 0)),    # resident across seq axis
        scratch_shapes=[pltpu.VMEM((Bb, Hp), jnp.float32)],       # hidden-state carry
    )

    out_p = pl.pallas_call(
        kernel,
        out_shape=jax.ShapeDtypeStruct((Bp, Cp), jnp.float32),
        grid_spec=grid_spec,
        compiler_params=pltpu.CompilerParams(
            dimension_semantics=("parallel", "arbitrary"),        # batch across TCs, seq serial
            vmem_limit_bytes=_pick_vmem_limit_bytes()),
    )(x_sm, w_ih_p, w_hh_p, b_ih_p, b_hhn_p, w_fc_p, b_fc_p)

    return out_p[:B, :num_classes]


def init_params(key, input_size, hidden_size, num_classes):
    """Deterministic synthetic parameters (PyTorch-style uniform init)."""
    k = jax.random.split(key, 6)
    bound_gru = 1.0 / jnp.sqrt(hidden_size)
    bound_fc = 1.0 / jnp.sqrt(hidden_size)
    # Stored pre-transposed relative to PyTorch: (I, 3H), (H, 3H). Gate order [r, z, n].
    return {
        "w_ih": jax.random.uniform(k[0], (input_size, 3 * hidden_size),
                                   jnp.float32, -bound_gru, bound_gru),
        "w_hh": jax.random.uniform(k[1], (hidden_size, 3 * hidden_size),
                                   jnp.float32, -bound_gru, bound_gru),
        "b_ih": jax.random.uniform(k[2], (1, 3 * hidden_size),
                                   jnp.float32, -bound_gru, bound_gru),
        "b_hh": jax.random.uniform(k[3], (1, 3 * hidden_size),
                                   jnp.float32, -bound_gru, bound_gru),
        "w_fc": jax.random.uniform(k[4], (hidden_size, num_classes),
                                   jnp.float32, -bound_fc, bound_fc),
        "b_fc": jax.random.uniform(k[5], (1, num_classes),
                                   jnp.float32, -bound_fc, bound_fc),
    }


def _reference_forward(x, params, hidden_size):
    """Pure-JAX GRU + Linear + Softmax reference for the correctness check."""
    B, S, I = x.shape
    H = hidden_size
    h = jnp.zeros((B, H), jnp.float32)
    for t in range(S):
        gi = x[:, t, :] @ params["w_ih"] + params["b_ih"]
        gh = h @ params["w_hh"] + params["b_hh"]
        r = jax.nn.sigmoid(gi[:, :H] + gh[:, :H])
        z = jax.nn.sigmoid(gi[:, H:2 * H] + gh[:, H:2 * H])
        n = jnp.tanh(gi[:, 2 * H:] + r * gh[:, 2 * H:])
        h = (1.0 - z) * n + z * h
    logits = h @ params["w_fc"] + params["b_fc"]
    return jax.nn.softmax(logits, axis=-1)


if __name__ == "__main__":
    # Small shapes consistent with the module's forward:
    # input.payload -> (batch, seq, input_size) since batch_first=True.
    B, S, I, H, C = 2, 8, 4, 32, 4

    key = jax.random.PRNGKey(0)
    kx, kp = jax.random.split(key)
    x = jax.random.normal(kx, (B, S, I), jnp.float32)
    params = init_params(kp, input_size=I, hidden_size=H, num_classes=C)

    ref = _reference_forward(x, params, H)

    # f32 MXU operands: tight correctness check.
    out = rnn_classifier_forward(x, params, hidden_size=H, num_classes=C)
    out = jax.block_until_ready(out)
    assert out.shape == (B, C)
    assert jnp.allclose(out, ref, atol=2e-3, rtol=2e-3), "f32 path: mismatch vs. reference"
    assert jnp.allclose(jnp.sum(out, axis=-1), 1.0, atol=1e-4), "softmax rows must sum to 1"

    # bf16 MXU operands (v6e/v7x rate + VMEM lever); gate math and softmax stay f32.
    out_bf16 = rnn_classifier_forward(x, params, hidden_size=H, num_classes=C,
                                      mxu_dtype=jnp.bfloat16)
    out_bf16 = jax.block_until_ready(out_bf16)
    assert out_bf16.shape == (B, C)
    assert jnp.allclose(out_bf16, ref, atol=3e-2, rtol=3e-2), "bf16 path: mismatch vs. reference"
    assert jnp.allclose(jnp.sum(out_bf16, axis=-1), 1.0, atol=1e-3), "softmax rows must sum to 1"

    print("KERNEL_OK")
</pallas_src>

<mosaic_0001>
module attributes {stable_mosaic.version = 11 : i64} {
  func.func @_gru_classifier_kernel(%arg0: i32, %arg1: i32, %arg2: memref<8x8x128xf32, #tpu.memory_space<vmem>>, %arg3: memref<128x384xf32, #tpu.memory_space<vmem>>, %arg4: memref<128x384xf32, #tpu.memory_space<vmem>>, %arg5: memref<1x384xf32, #tpu.memory_space<vmem>>, %arg6: memref<1x128xf32, #tpu.memory_space<vmem>>, %arg7: memref<128x128xf32, #tpu.memory_space<vmem>>, %arg8: memref<1x128xf32, #tpu.memory_space<vmem>>, %arg9: memref<8x128xf32, #tpu.memory_space<vmem>>, %arg10: memref<8x128xf32, #tpu.memory_space<vmem>>) attributes {dimension_semantics = [#tpu.dimension_semantics<parallel>, #tpu.dimension_semantics<arbitrary>], iteration_bounds = array<i64: 1, 1>, scalar_prefetch = 0 : i64, scratch_operands = 1 : i64, tpu.core_type = #tpu.core_type<tc>, window_params = [{transform_indices = @transform_0, window_bounds = array<i64: 8, 8, 128>}, {pipeline_mode = #tpu.pipeline_mode<synchronous>, transform_indices = @transform_1, window_bounds = array<i64: 128, 384>}, {pipeline_mode = #tpu.pipeline_mode<synchronous>, transform_indices = @transform_2, window_bounds = array<i64: 128, 384>}, {pipeline_mode = #tpu.pipeline_mode<synchronous>, transform_indices = @transform_3, window_bounds = array<i64: 1, 384>}, {pipeline_mode = #tpu.pipeline_mode<synchronous>, transform_indices = @transform_4, window_bounds = array<i64: 1, 128>}, {pipeline_mode = #tpu.pipeline_mode<synchronous>, transform_indices = @transform_5, window_bounds = array<i64: 128, 128>}, {pipeline_mode = #tpu.pipeline_mode<synchronous>, transform_indices = @transform_6, window_bounds = array<i64: 1, 128>}, {transform_indices = @transform_7, window_bounds = array<i64: 8, 128>}]} {
    %c0_i32 = arith.constant 0 : i32
    %0 = arith.cmpi eq, %arg1, %c0_i32 : i32
    %1 = arith.extui %0 : i1 to i32
    %c0_i32_0 = arith.constant 0 : i32
    %2 = arith.cmpi ne, %1, %c0_i32_0 : i32
    scf.if %2 {
      %cst_41 = arith.constant 0.000000e+00 : f32
      %244 = vector.broadcast %cst_41 : f32 to vector<8x128xf32>
      %c0_42 = arith.constant 0 : index
      %c0_43 = arith.constant 0 : index
      %245 = vector.load %arg10[%c0_42, %c0_43] : memref<8x128xf32, #tpu.memory_space<vmem>>, vector<8x128xf32>
      tpu.vector_store %arg10[%c0_42, %c0_43], %244 {strides = array<i32>} : memref<8x128xf32, #tpu.memory_space<vmem>>, vector<8x128xf32>,
    } else {
    }
    %c0 = arith.constant 0 : index
    %c0_1 = arith.constant 0 : index
    %c0_2 = arith.constant 0 : index
    %3 = vector.load %arg2[%c0, %c0_1, %c0_2] : memref<8x8x128xf32, #tpu.memory_space<vmem>>, vector<8x8x128xf32>
    %4 = vector.shape_cast %3 : vector<8x8x128xf32> to vector<64x128xf32>
    %c0_3 = arith.constant 0 : index
    %c0_4 = arith.constant 0 : index
    %5 = vector.load %arg3[%c0_3, %c0_4] : memref<128x384xf32, #tpu.memory_space<vmem>>, vector<128x384xf32>
    %cst = arith.constant dense<0.000000e+00> : vector<64x384xf32>
    %6 = tpu.matmul %4, %5, %cst {dimension_numbers = #tpu.dot_dimension_numbers<[1], [0], [0], [1], [0, 0, 1, 1], [], []>} : vector<64x128xf32>, vector<128x384xf32>, vector<64x384xf32> -> vector<64x384xf32>
    %c0_5 = arith.constant 0 : index
    %c0_6 = arith.constant 0 : index
    %7 = vector.load %arg5[%c0_5, %c0_6] : memref<1x384xf32, #tpu.memory_space<vmem>>, vector<1x384xf32>
    %8 = vector.broadcast %7 : vector<1x384xf32> to vector<64x384xf32>
    %9 = arith.addf %6, %8 : vector<64x384xf32>
    %10 = vector.shape_cast %9 : vector<64x384xf32> to vector<8x8x384xf32>
    %c0_7 = arith.constant 0 : index
    %c0_8 = arith.constant 0 : index
    %11 = vector.load %arg4[%c0_7, %c0_8] : memref<128x384xf32, #tpu.memory_space<vmem>>, vector<128x384xf32>
    %c0_9 = arith.constant 0 : index
    %c0_10 = arith.constant 0 : index
    %12 = vector.load %arg6[%c0_9, %c0_10] : memref<1x128xf32, #tpu.memory_space<vmem>>, vector<1x128xf32>
    %13 = vector.shape_cast %12 : vector<1x128xf32> to vector<1x128xf32>
    %14 = vector.broadcast %13 : vector<1x128xf32> to vector<8x128xf32>
    %c0_11 = arith.constant 0 : index
    %c0_12 = arith.constant 0 : index
    %15 = vector.load %arg10[%c0_11, %c0_12] : memref<8x128xf32, #tpu.memory_space<vmem>>, vector<8x128xf32>
    %16 = vector.extract_strided_slice %10 {offsets = [0, 0, 0], sizes = [1, 8, 384], strides = [1, 1, 1]} : vector<8x8x384xf32> to vector<1x8x384xf32>
    %17 = vector.shape_cast %16 : vector<1x8x384xf32> to vector<8x384xf32>
    %cst_13 = arith.constant dense<0.000000e+00> : vector<8x384xf32>
    %18 = tpu.matmul %15, %11, %cst_13 {dimension_numbers = #tpu.dot_dimension_numbers<[1], [0], [0], [1], [0, 0, 1, 1], [], []>} : vector<8x128xf32>, vector<128x384xf32>, vector<8x384xf32> -> vector<8x384xf32>
    %19 = vector.extract_strided_slice %17 {offsets = [0, 0], sizes = [8, 128], strides = [1, 1]} : vector<8x384xf32> to vector<8x128xf32>
    %20 = vector.extract_strided_slice %17 {offsets = [0, 128], sizes = [8, 128], strides = [1, 1]} : vector<8x384xf32> to vector<8x128xf32>
    %21 = vector.extract_strided_slice %17 {offsets = [0, 256], sizes = [8, 128], strides = [1, 1]} : vector<8x384xf32> to vector<8x128xf32>
    %22 = vector.extract_strided_slice %18 {offsets = [0, 0], sizes = [8, 128], strides = [1, 1]} : vector<8x384xf32> to vector<8x128xf32>
    %23 = vector.extract_strided_slice %18 {offsets = [0, 128], sizes = [8, 128], strides = [1, 1]} : vector<8x384xf32> to vector<8x128xf32>
    %24 = vector.extract_strided_slice %18 {offsets = [0, 256], sizes = [8, 128], strides = [1, 1]} : vector<8x384xf32> to vector<8x128xf32>
    %25 = arith.addf %19, %22 : vector<8x128xf32>
    %26 = arith.negf %25 : vector<8x128xf32>
    %27 = math.exp %26 : vector<8x128xf32>
    %cst_14 = arith.constant 1.000000e+00 : f32
    %28 = vector.broadcast %cst_14 : f32 to vector<8x128xf32>
    %29 = arith.addf %28, %27 : vector<8x128xf32>
    %30 = arith.divf %28, %29 : vector<8x128xf32>
    %31 = arith.addf %20, %23 : vector<8x128xf32>
    %32 = arith.negf %31 : vector<8x128xf32>
    %33 = math.exp %32 : vector<8x128xf32>
    %cst_15 = arith.constant 1.000000e+00 : f32
    %34 = vector.broadcast %cst_15 : f32 to vector<8x128xf32>
    %35 = arith.addf %34, %33 : vector<8x128xf32>
    %36 = arith.divf %34, %35 : vector<8x128xf32>
    %37 = arith.addf %24, %14 : vector<8x128xf32>
    %38 = arith.mulf %30, %37 : vector<8x128xf32>
    %39 = arith.addf %21, %38 : vector<8x128xf32>
    %40 = math.tanh %39 : vector<8x128xf32>
    %41 = arith.subf %15, %40 : vector<8x128xf32>
    %42 = arith.mulf %36, %41 : vector<8x128xf32>
    %43 = arith.addf %40, %42 : vector<8x128xf32>
    %44 = vector.extract_strided_slice %10 {offsets = [1, 0, 0], sizes = [1, 8, 384], strides = [1, 1, 1]} : vector<8x8x384xf32> to vector<1x8x384xf32>
    %45 = vector.shape_cast %44 : vector<1x8x384xf32> to vector<8x384xf32>
    %cst_16 = arith.constant dense<0.000000e+00> : vector<8x384xf32>
    %46 = tpu.matmul %43, %11, %cst_16 {dimension_numbers = #tpu.dot_dimension_numbers<[1], [0], [0], [1], [0, 0, 1, 1], [], []>} : vector<8x128xf32>, vector<128x384xf32>, vector<8x384xf32> -> vector<8x384xf32>
    %47 = vector.extract_strided_slice %45 {offsets = [0, 0], sizes = [8, 128], strides = [1, 1]} : vector<8x384xf32> to vector<8x128xf32>
    %48 = vector.extract_strided_slice %45 {offsets = [0, 128], sizes = [8, 128], strides = [1, 1]} : vector<8x384xf32> to vector<8x128xf32>
    %49 = vector.extract_strided_slice %45 {offsets = [0, 256], sizes = [8, 128], strides = [1, 1]} : vector<8x384xf32> to vector<8x128xf32>
    %50 = vector.extract_strided_slice %46 {offsets = [0, 0], sizes = [8, 128], strides = [1, 1]} : vector<8x384xf32> to vector<8x128xf32>
    %51 = vector.extract_strided_slice %46 {offsets = [0, 128], sizes = [8, 128], strides = [1, 1]} : vector<8x384xf32> to vector<8x128xf32>
    %52 = vector.extract_strided_slice %46 {offsets = [0, 256], sizes = [8, 128], strides = [1, 1]} : vector<8x384xf32> to vector<8x128xf32>
    %53 = arith.addf %47, %50 : vector<8x128xf32>
    %54 = arith.negf %53 : vector<8x128xf32>
    %55 = math.exp %54 : vector<8x128xf32>
    %cst_17 = arith.constant 1.000000e+00 : f32
    %56 = vector.broadcast %cst_17 : f32 to vector<8x128xf32>
    %57 = arith.addf %56, %55 : vector<8x128xf32>
    %58 = arith.divf %56, %57 : vector<8x128xf32>
    %59 = arith.addf %48, %51 : vector<8x128xf32>
    %60 = arith.negf %59 : vector<8x128xf32>
    %61 = math.exp %60 : vector<8x128xf32>
    %cst_18 = arith.constant 1.000000e+00 : f32
    %62 = vector.broadcast %cst_18 : f32 to vector<8x128xf32>
    %63 = arith.addf %62, %61 : vector<8x128xf32>
    %64 = arith.divf %62, %63 : vector<8x128xf32>
    %65 = arith.addf %52, %14 : vector<8x128xf32>
    %66 = arith.mulf %58, %65 : vector<8x128xf32>
    %67 = arith.addf %49, %66 : vector<8x128xf32>
    %68 = math.tanh %67 : vector<8x128xf32>
    %69 = arith.subf %43, %68 : vector<8x128xf32>
    %70 = arith.mulf %64, %69 : vector<8x128xf32>
    %71 = arith.addf %68, %70 : vector<8x128xf32>
    %72 = vector.extract_strided_slice %10 {offsets = [2, 0, 0], sizes = [1, 8, 384], strides = [1, 1, 1]} : vector<8x8x384xf32> to vector<1x8x384xf32>
    %73 = vector.shape_cast %72 : vector<1x8x384xf32> to vector<8x384xf32>
    %cst_19 = arith.constant dense<0.000000e+00> : vector<8x384xf32>
    %74 = tpu.matmul %71, %11, %cst_19 {dimension_numbers = #tpu.dot_dimension_numbers<[1], [0], [0], [1], [0, 0, 1, 1], [], []>} : vector<8x128xf32>, vector<128x384xf32>, vector<8x384xf32> -> vector<8x384xf32>
    %75 = vector.extract_strided_slice %73 {offsets = [0, 0], sizes = [8, 128], strides = [1, 1]} : vector<8x384xf32> to vector<8x128xf32>
    %76 = vector.extract_strided_slice %73 {offsets = [0, 128], sizes = [8, 128], strides = [1, 1]} : vector<8x384xf32> to vector<8x128xf32>
    %77 = vector.extract_strided_slice %73 {offsets = [0, 256], sizes = [8, 128], strides = [1, 1]} : vector<8x384xf32> to vector<8x128xf32>
    %78 = vector.extract_strided_slice %74 {offsets = [0, 0], sizes = [8, 128], strides = [1, 1]} : vector<8x384xf32> to vector<8x128xf32>
    %79 = vector.extract_strided_slice %74 {offsets = [0, 128], sizes = [8, 128], strides = [1, 1]} : vector<8x384xf32> to vector<8x128xf32>
    %80 = vector.extract_strided_slice %74 {offsets = [0, 256], sizes = [8, 128], strides = [1, 1]} : vector<8x384xf32> to vector<8x128xf32>
    %81 = arith.addf %75, %78 : vector<8x128xf32>
    %82 = arith.negf %81 : vector<8x128xf32>
    %83 = math.exp %82 : vector<8x128xf32>
    %cst_20 = arith.constant 1.000000e+00 : f32
    %84 = vector.broadcast %cst_20 : f32 to vector<8x128xf32>
    %85 = arith.addf %84, %83 : vector<8x128xf32>
    %86 = arith.divf %84, %85 : vector<8x128xf32>
    %87 = arith.addf %76, %79 : vector<8x128xf32>
    %88 = arith.negf %87 : vector<8x128xf32>
    %89 = math.exp %88 : vector<8x128xf32>
    %cst_21 = arith.constant 1.000000e+00 : f32
    %90 = vector.broadcast %cst_21 : f32 to vector<8x128xf32>
    %91 = arith.addf %90, %89 : vector<8x128xf32>
    %92 = arith.divf %90, %91 : vector<8x128xf32>
    %93 = arith.addf %80, %14 : vector<8x128xf32>
    %94 = arith.mulf %86, %93 : vector<8x128xf32>
    %95 = arith.addf %77, %94 : vector<8x128xf32>
    %96 = math.tanh %95 : vector<8x128xf32>
    %97 = arith.subf %71, %96 : vector<8x128xf32>
    %98 = arith.mulf %92, %97 : vector<8x128xf32>
    %99 = arith.addf %96, %98 : vector<8x128xf32>
    %100 = vector.extract_strided_slice %10 {offsets = [3, 0, 0], sizes = [1, 8, 384], strides = [1, 1, 1]} : vector<8x8x384xf32> to vector<1x8x384xf32>
    %101 = vector.shape_cast %100 : vector<1x8x384xf32> to vector<8x384xf32>
    %cst_22 = arith.constant dense<0.000000e+00> : vector<8x384xf32>
    %102 = tpu.matmul %99, %11, %cst_22 {dimension_numbers = #tpu.dot_dimension_numbers<[1], [0], [0], [1], [0, 0, 1, 1], [], []>} : vector<8x128xf32>, vector<128x384xf32>, vector<8x384xf32> -> vector<8x384xf32>
    %103 = vector.extract_strided_slice %101 {offsets = [0, 0], sizes = [8, 128], strides = [1, 1]} : vector<8x384xf32> to vector<8x128xf32>
    %104 = vector.extract_strided_slice %101 {offsets = [0, 128], sizes = [8, 128], strides = [1, 1]} : vector<8x384xf32> to vector<8x128xf32>
    %105 = vector.extract_strided_slice %101 {offsets = [0, 256], sizes = [8, 128], strides = [1, 1]} : vector<8x384xf32> to vector<8x128xf32>
    %106 = vector.extract_strided_slice %102 {offsets = [0, 0], sizes = [8, 128], strides = [1, 1]} : vector<8x384xf32> to vector<8x128xf32>
    %107 = vector.extract_strided_slice %102 {offsets = [0, 128], sizes = [8, 128], strides = [1, 1]} : vector<8x384xf32> to vector<8x128xf32>
    %108 = vector.extract_strided_slice %102 {offsets = [0, 256], sizes = [8, 128], strides = [1, 1]} : vector<8x384xf32> to vector<8x128xf32>
    %109 = arith.addf %103, %106 : vector<8x128xf32>
    %110 = arith.negf %109 : vector<8x128xf32>
    %111 = math.exp %110 : vector<8x128xf32>
    %cst_23 = arith.constant 1.000000e+00 : f32
    %112 = vector.broadcast %cst_23 : f32 to vector<8x128xf32>
    %113 = arith.addf %112, %111 : vector<8x128xf32>
    %114 = arith.divf %112, %113 : vector<8x128xf32>
    %115 = arith.addf %104, %107 : vector<8x128xf32>
    %116 = arith.negf %115 : vector<8x128xf32>
    %117 = math.exp %116 : vector<8x128xf32>
    %cst_24 = arith.constant 1.000000e+00 : f32
    %118 = vector.broadcast %cst_24 : f32 to vector<8x128xf32>
    %119 = arith.addf %118, %117 : vector<8x128xf32>
    %120 = arith.divf %118, %119 : vector<8x128xf32>
    %121 = arith.addf %108, %14 : vector<8x128xf32>
    %122 = arith.mulf %114, %121 : vector<8x128xf32>
    %123 = arith.addf %105, %122 : vector<8x128xf32>
    %124 = math.tanh %123 : vector<8x128xf32>
    %125 = arith.subf %99, %124 : vector<8x128xf32>
    %126 = arith.mulf %120, %125 : vector<8x128xf32>
    %127 = arith.addf %124, %126 : vector<8x128xf32>
    %128 = vector.extract_strided_slice %10 {offsets = [4, 0, 0], sizes = [1, 8, 384], strides = [1, 1, 1]} : vector<8x8x384xf32> to vector<1x8x384xf32>
    %129 = vector.shape_cast %128 : vector<1x8x384xf32> to vector<8x384xf32>
    %cst_25 = arith.constant dense<0.000000e+00> : vector<8x384xf32>
    %130 = tpu.matmul %127, %11, %cst_25 {dimension_numbers = #tpu.dot_dimension_numbers<[1], [0], [0], [1], [0, 0, 1, 1], [], []>} : vector<8x128xf32>, vector<128x384xf32>, vector<8x384xf32> -> vector<8x384xf32>
    %131 = vector.extract_strided_slice %129 {offsets = [0, 0], sizes = [8, 128], strides = [1, 1]} : vector<8x384xf32> to vector<8x128xf32>
    %132 = vector.extract_strided_slice %129 {offsets = [0, 128], sizes = [8, 128], strides = [1, 1]} : vector<8x384xf32> to vector<8x128xf32>
    %133 = vector.extract_strided_slice %129 {offsets = [0, 256], sizes = [8, 128], strides = [1, 1]} : vector<8x384xf32> to vector<8x128xf32>
    %134 = vector.extract_strided_slice %130 {offsets = [0, 0], sizes = [8, 128], strides = [1, 1]} : vector<8x384xf32> to vector<8x128xf32>
    %135 = vector.extract_strided_slice %130 {offsets = [0, 128], sizes = [8, 128], strides = [1, 1]} : vector<8x384xf32> to vector<8x128xf32>
    %136 = vector.extract_strided_slice %130 {offsets = [0, 256], sizes = [8, 128], strides = [1, 1]} : vector<8x384xf32> to vector<8x128xf32>
    %137 = arith.addf %131, %134 : vector<8x128xf32>
    %138 = arith.negf %137 : vector<8x128xf32>
    %139 = math.exp %138 : vector<8x128xf32>
    %cst_26 = arith.constant 1.000000e+00 : f32
    %140 = vector.broadcast %cst_26 : f32 to vector<8x128xf32>
    %141 = arith.addf %140, %139 : vector<8x128xf32>
    %142 = arith.divf %140, %141 : vector<8x128xf32>
    %143 = arith.addf %132, %135 : vector<8x128xf32>
    %144 = arith.negf %143 : vector<8x128xf32>
    %145 = math.exp %144 : vector<8x128xf32>
    %cst_27 = arith.constant 1.000000e+00 : f32
    %146 = vector.broadcast %cst_27 : f32 to vector<8x128xf32>
    %147 = arith.addf %146, %145 : vector<8x128xf32>
    %148 = arith.divf %146, %147 : vector<8x128xf32>
    %149 = arith.addf %136, %14 : vector<8x128xf32>
    %150 = arith.mulf %142, %149 : vector<8x128xf32>
    %151 = arith.addf %133, %150 : vector<8x128xf32>
    %152 = math.tanh %151 : vector<8x128xf32>
    %153 = arith.subf %127, %152 : vector<8x128xf32>
    %154 = arith.mulf %148, %153 : vector<8x128xf32>
    %155 = arith.addf %152, %154 : vector<8x128xf32>
    %156 = vector.extract_strided_slice %10 {offsets = [5, 0, 0], sizes = [1, 8, 384], strides = [1, 1, 1]} : vector<8x8x384xf32> to vector<1x8x384xf32>
    %157 = vector.shape_cast %156 : vector<1x8x384xf32> to vector<8x384xf32>
    %cst_28 = arith.constant dense<0.000000e+00> : vector<8x384xf32>
    %158 = tpu.matmul %155, %11, %cst_28 {dimension_numbers = #tpu.dot_dimension_numbers<[1], [0], [0], [1], [0, 0, 1, 1], [], []>} : vector<8x128xf32>, vector<128x384xf32>, vector<8x384xf32> -> vector<8x384xf32>
    %159 = vector.extract_strided_slice %157 {offsets = [0, 0], sizes = [8, 128], strides = [1, 1]} : vector<8x384xf32> to vector<8x128xf32>
    %160 = vector.extract_strided_slice %157 {offsets = [0, 128], sizes = [8, 128], strides = [1, 1]} : vector<8x384xf32> to vector<8x128xf32>
    %161 = vector.extract_strided_slice %157 {offsets = [0, 256], sizes = [8, 128], strides = [1, 1]} : vector<8x384xf32> to vector<8x128xf32>
    %162 = vector.extract_strided_slice %158 {offsets = [0, 0], sizes = [8, 128], strides = [1, 1]} : vector<8x384xf32> to vector<8x128xf32>
    %163 = vector.extract_strided_slice %158 {offsets = [0, 128], sizes = [8, 128], strides = [1, 1]} : vector<8x384xf32> to vector<8x128xf32>
    %164 = vector.extract_strided_slice %158 {offsets = [0, 256], sizes = [8, 128], strides = [1, 1]} : vector<8x384xf32> to vector<8x128xf32>
    %165 = arith.addf %159, %162 : vector<8x128xf32>
    %166 = arith.negf %165 : vector<8x128xf32>
    %167 = math.exp %166 : vector<8x128xf32>
    %cst_29 = arith.constant 1.000000e+00 : f32
    %168 = vector.broadcast %cst_29 : f32 to vector<8x128xf32>
    %169 = arith.addf %168, %167 : vector<8x128xf32>
    %170 = arith.divf %168, %169 : vector<8x128xf32>
    %171 = arith.addf %160, %163 : vector<8x128xf32>
    %172 = arith.negf %171 : vector<8x128xf32>
    %173 = math.exp %172 : vector<8x128xf32>
    %cst_30 = arith.constant 1.000000e+00 : f32
    %174 = vector.broadcast %cst_30 : f32 to vector<8x128xf32>
    %175 = arith.addf %174, %173 : vector<8x128xf32>
    %176 = arith.divf %174, %175 : vector<8x128xf32>
    %177 = arith.addf %164, %14 : vector<8x128xf32>
    %178 = arith.mulf %170, %177 : vector<8x128xf32>
    %179 = arith.addf %161, %178 : vector<8x128xf32>
    %180 = math.tanh %179 : vector<8x128xf32>
    %181 = arith.subf %155, %180 : vector<8x128xf32>
    %182 = arith.mulf %176, %181 : vector<8x128xf32>
    %183 = arith.addf %180, %182 : vector<8x128xf32>
    %184 = vector.extract_strided_slice %10 {offsets = [6, 0, 0], sizes = [1, 8, 384], strides = [1, 1, 1]} : vector<8x8x384xf32> to vector<1x8x384xf32>
    %185 = vector.shape_cast %184 : vector<1x8x384xf32> to vector<8x384xf32>
    %cst_31 = arith.constant dense<0.000000e+00> : vector<8x384xf32>
    %186 = tpu.matmul %183, %11, %cst_31 {dimension_numbers = #tpu.dot_dimension_numbers<[1], [0], [0], [1], [0, 0, 1, 1], [], []>} : vector<8x128xf32>, vector<128x384xf32>, vector<8x384xf32> -> vector<8x384xf32>
    %187 = vector.extract_strided_slice %185 {offsets = [0, 0], sizes = [8, 128], strides = [1, 1]} : vector<8x384xf32> to vector<8x128xf32>
    %188 = vector.extract_strided_slice %185 {offsets = [0, 128], sizes = [8, 128], strides = [1, 1]} : vector<8x384xf32> to vector<8x128xf32>
    %189 = vector.extract_strided_slice %185 {offsets = [0, 256], sizes = [8, 128], strides = [1, 1]} : vector<8x384xf32> to vector<8x128xf32>
    %190 = vector.extract_strided_slice %186 {offsets = [0, 0], sizes = [8, 128], strides = [1, 1]} : vector<8x384xf32> to vector<8x128xf32>
    %191 = vector.extract_strided_slice %186 {offsets = [0, 128], sizes = [8, 128], strides = [1, 1]} : vector<8x384xf32> to vector<8x128xf32>
    %192 = vector.extract_strided_slice %186 {offsets = [0, 256], sizes = [8, 128], strides = [1, 1]} : vector<8x384xf32> to vector<8x128xf32>
    %193 = arith.addf %187, %190 : vector<8x128xf32>
    %194 = arith.negf %193 : vector<8x128xf32>
    %195 = math.exp %194 : vector<8x128xf32>
    %cst_32 = arith.constant 1.000000e+00 : f32
    %196 = vector.broadcast %cst_32 : f32 to vector<8x128xf32>
    %197 = arith.addf %196, %195 : vector<8x128xf32>
    %198 = arith.divf %196, %197 : vector<8x128xf32>
    %199 = arith.addf %188, %191 : vector<8x128xf32>
    %200 = arith.negf %199 : vector<8x128xf32>
    %201 = math.exp %200 : vector<8x128xf32>
    %cst_33 = arith.constant 1.000000e+00 : f32
    %202 = vector.broadcast %cst_33 : f32 to vector<8x128xf32>
    %203 = arith.addf %202, %201 : vector<8x128xf32>
    %204 = arith.divf %202, %203 : vector<8x128xf32>
    %205 = arith.addf %192, %14 : vector<8x128xf32>
    %206 = arith.mulf %198, %205 : vector<8x128xf32>
    %207 = arith.addf %189, %206 : vector<8x128xf32>
    %208 = math.tanh %207 : vector<8x128xf32>
    %209 = arith.subf %183, %208 : vector<8x128xf32>
    %210 = arith.mulf %204, %209 : vector<8x128xf32>
    %211 = arith.addf %208, %210 : vector<8x128xf32>
    %212 = vector.extract_strided_slice %10 {offsets = [7, 0, 0], sizes = [1, 8, 384], strides = [1, 1, 1]} : vector<8x8x384xf32> to vector<1x8x384xf32>
    %213 = vector.shape_cast %212 : vector<1x8x384xf32> to vector<8x384xf32>
    %cst_34 = arith.constant dense<0.000000e+00> : vector<8x384xf32>
    %214 = tpu.matmul %211, %11, %cst_34 {dimension_numbers = #tpu.dot_dimension_numbers<[1], [0], [0], [1], [0, 0, 1, 1], [], []>} : vector<8x128xf32>, vector<128x384xf32>, vector<8x384xf32> -> vector<8x384xf32>
    %215 = vector.extract_strided_slice %213 {offsets = [0, 0], sizes = [8, 128], strides = [1, 1]} : vector<8x384xf32> to vector<8x128xf32>
    %216 = vector.extract_strided_slice %213 {offsets = [0, 128], sizes = [8, 128], strides = [1, 1]} : vector<8x384xf32> to vector<8x128xf32>
    %217 = vector.extract_strided_slice %213 {offsets = [0, 256], sizes = [8, 128], strides = [1, 1]} : vector<8x384xf32> to vector<8x128xf32>
    %218 = vector.extract_strided_slice %214 {offsets = [0, 0], sizes = [8, 128], strides = [1, 1]} : vector<8x384xf32> to vector<8x128xf32>
    %219 = vector.extract_strided_slice %214 {offsets = [0, 128], sizes = [8, 128], strides = [1, 1]} : vector<8x384xf32> to vector<8x128xf32>
    %220 = vector.extract_strided_slice %214 {offsets = [0, 256], sizes = [8, 128], strides = [1, 1]} : vector<8x384xf32> to vector<8x128xf32>
    %221 = arith.addf %215, %218 : vector<8x128xf32>
    %222 = arith.negf %221 : vector<8x128xf32>
    %223 = math.exp %222 : vector<8x128xf32>
    %cst_35 = arith.constant 1.000000e+00 : f32
    %224 = vector.broadcast %cst_35 : f32 to vector<8x128xf32>
    %225 = arith.addf %224, %223 : vector<8x128xf32>
    %226 = arith.divf %224, %225 : vector<8x128xf32>
    %227 = arith.addf %216, %219 : vector<8x128xf32>
    %228 = arith.negf %227 : vector<8x128xf32>
    %229 = math.exp %228 : vector<8x128xf32>
    %cst_36 = arith.constant 1.000000e+00 : f32
    %230 = vector.broadcast %cst_36 : f32 to vector<8x128xf32>
    %231 = arith.addf %230, %229 : vector<8x128xf32>
    %232 = arith.divf %230, %231 : vector<8x128xf32>
    %233 = arith.addf %220, %14 : vector<8x128xf32>
    %234 = arith.mulf %226, %233 : vector<8x128xf32>
    %235 = arith.addf %217, %234 : vector<8x128xf32>
    %236 = math.tanh %235 : vector<8x128xf32>
    %237 = arith.subf %211, %236 : vector<8x128xf32>
    %238 = arith.mulf %232, %237 : vector<8x128xf32>
    %239 = arith.addf %236, %238 : vector<8x128xf32>
    %c0_37 = arith.constant 0 : index
    %c0_38 = arith.constant 0 : index
    %240 = vector.load %arg10[%c0_37, %c0_38] : memref<8x128xf32, #tpu.memory_space<vmem>>, vector<8x128xf32>
    tpu.vector_store %arg10[%c0_37, %c0_38], %239 {strides = array<i32>} : memref<8x128xf32, #tpu.memory_space<vmem>>, vector<8x128xf32>,
    %c0_i32_39 = arith.constant 0 : i32
    %241 = arith.cmpi eq, %arg1, %c0_i32_39 : i32
    %242 = arith.extui %241 : i1 to i32
    %c0_i32_40 = arith.constant 0 : i32
    %243 = arith.cmpi ne, %242, %c0_i32_40 : i32
    scf.if %243 {
      %c0_41 = arith.constant 0 : index
      %c0_42 = arith.constant 0 : index
      %244 = vector.load %arg7[%c0_41, %c0_42] : memref<128x128xf32, #tpu.memory_space<vmem>>, vector<128x128xf32>
      %cst_43 = arith.constant dense<0.000000e+00> : vector<8x128xf32>
      %245 = tpu.matmul %239, %244, %cst_43 {dimension_numbers = #tpu.dot_dimension_numbers<[1], [0], [0], [1], [0, 0, 1, 1], [], []>} : vector<8x128xf32>, vector<128x128xf32>, vector<8x128xf32> -> vector<8x128xf32>
      %c0_44 = arith.constant 0 : index
      %c0_45 = arith.constant 0 : index
      %246 = vector.load %arg8[%c0_44, %c0_45] : memref<1x128xf32, #tpu.memory_space<vmem>>, vector<1x128xf32>
      %247 = vector.broadcast %246 : vector<1x128xf32> to vector<8x128xf32>
      %248 = arith.addf %245, %247 : vector<8x128xf32>
      %249 = tpu.iota {dimensions = array<i32: 1>} : vector<8x128xi32>
      %c4_i32 = arith.constant 4 : i32
      %250 = vector.broadcast %c4_i32 : i32 to vector<8x128xi32>
      %251 = arith.cmpi slt, %249, %250 : vector<8x128xi32>
      %cst_46 = arith.constant -1.000000e+30 : f32
      %252 = vector.broadcast %cst_46 : f32 to vector<8x128xf32>
      %253 = arith.select %251, %248, %252 : vector<8x128xi1>, vector<8x128xf32>
      %cst_47 = arith.constant dense<0xFF800000> : vector<8xf32>
      %254 = vector.multi_reduction <maximumf>, %253, %cst_47 [1] : vector<8x128xf32> to vector<8xf32>
      %255 = vector.shape_cast %254 : vector<8xf32> to vector<8x1xf32>
      %256 = vector.broadcast %255 : vector<8x1xf32> to vector<8x128xf32>
      %257 = arith.subf %253, %256 : vector<8x128xf32>
      %258 = math.exp %257 : vector<8x128xf32>
      %cst_48 = arith.constant dense<0.000000e+00> : vector<8xf32>
      %259 = vector.multi_reduction <add>, %258, %cst_48 [1] : vector<8x128xf32> to vector<8xf32>
      %260 = vector.shape_cast %259 : vector<8xf32> to vector<8x1xf32>
      %261 = vector.broadcast %260 : vector<8x1xf32> to vector<8x128xf32>
      %262 = arith.divf %258, %261 : vector<8x128xf32>
      %c0_49 = arith.constant 0 : index
      %c0_50 = arith.constant 0 : index
      %263 = vector.load %arg9[%c0_49, %c0_50] : memref<8x128xf32, #tpu.memory_space<vmem>>, vector<8x128xf32>
      tpu.vector_store %arg9[%c0_49, %c0_50], %262 {strides = array<i32>} : memref<8x128xf32, #tpu.memory_space<vmem>>, vector<8x128xf32>,
    } else {
    }
    return
  }
  func.func @transform_0(%arg0: i32, %arg1: i32) -> (i32, i32, i32) {
    %c0_i32 = arith.constant 0 : i32
    %c0_i32_0 = arith.constant 0 : i32
    return %arg1, %arg0, %c0_i32 : i32, i32, i32
  }
  func.func @transform_1(%arg0: i32, %arg1: i32) -> (i32, i32) {
    %c0_i32 = arith.constant 0 : i32
    %c0_i32_0 = arith.constant 0 : i32
    %c0_i32_1 = arith.constant 0 : i32
    return %c0_i32, %c0_i32_0 : i32, i32
  }
  func.func @transform_2(%arg0: i32, %arg1: i32) -> (i32, i32) {
    %c0_i32 = arith.constant 0 : i32
    %c0_i32_0 = arith.constant 0 : i32
    %c0_i32_1 = arith.constant 0 : i32
    return %c0_i32, %c0_i32_0 : i32, i32
  }
  func.func @transform_3(%arg0: i32, %arg1: i32) -> (i32, i32) {
    %c0_i32 = arith.constant 0 : i32
    %c0_i32_0 = arith.constant 0 : i32
    %c0_i32_1 = arith.constant 0 : i32
    return %c0_i32, %c0_i32_0 : i32, i32
  }
  func.func @transform_4(%arg0: i32, %arg1: i32) -> (i32, i32) {
    %c0_i32 = arith.constant 0 : i32
    %c0_i32_0 = arith.constant 0 : i32
    %c0_i32_1 = arith.constant 0 : i32
    return %c0_i32, %c0_i32_0 : i32, i32
  }
  func.func @transform_5(%arg0: i32, %arg1: i32) -> (i32, i32) {
    %c0_i32 = arith.constant 0 : i32
    %c0_i32_0 = arith.constant 0 : i32
    %c0_i32_1 = arith.constant 0 : i32
    return %c0_i32, %c0_i32_0 : i32, i32
  }
  func.func @transform_6(%arg0: i32, %arg1: i32) -> (i32, i32) {
    %c0_i32 = arith.constant 0 : i32
    %c0_i32_0 = arith.constant 0 : i32
    %c0_i32_1 = arith.constant 0 : i32
    return %c0_i32, %c0_i32_0 : i32, i32
  }
  func.func @transform_7(%arg0: i32, %arg1: i32) -> (i32, i32) {
    %c0_i32 = arith.constant 0 : i32
    %c0_i32_0 = arith.constant 0 : i32
    return %arg0, %c0_i32 : i32, i32
  }
}

</mosaic_0001>

<bundles_post_ra>
// kernel: tpu_custom_call.1
= control target key start
LH: loop header
LB: loop body
LE: loop exit
PB: predicated region body
PF: predicated region fallthrough
CT: control target
= control target key end

     0   :  { %12 = vsyncpa [#allocation4], 0  ;;  %s3744_s0 = inlined_call_operand.hbm [shape: f32[8,8,128], index: 0, kind: input, shape index: {}]   ;;  %s3745_s1 = inlined_call_operand.hbm [shape: f32[128,384], index: 1, kind: input, shape index: {}]   ;;  %s3746_s2 = inlined_call_operand.hbm [shape: f32[128,384], index: 2, kind: input, shape index: {}]   ;;  %s3747_s3 = inlined_call_operand.vmem [shape: f32[1,384], index: 3, kind: input, shape index: {}]   ;;  %s3748_s4 = inlined_call_operand.vmem [shape: f32[1,128], index: 4, kind: input, shape index: {}]   ;;  %s3749_s5 = inlined_call_operand.hbm [shape: f32[128,128], index: 5, kind: input, shape index: {}]   ;;  %s3750_s6 = inlined_call_operand.vmem [shape: f32[1,128], index: 6, kind: input, shape index: {}]   ;;  %s3751_s7 = inlined_call_operand.hbm [shape: f32[8,128], index: 7, kind: output, shape index: {}]  }
   0x1   :  { %13 = vsyncpa [#allocation7], 0 }
   0x2   :  { %14 = vsyncpa [#allocation10], 0 }
   0x3   :  { %15 = vsyncpa [#allocation5], 0  ;;  %s3194_s24 = smov [#allocation6]   ;;  %s3076_s28 = scalar_lea.hbm %s3745_s1, 6144 }
   0x4   :  { %s33_s25 = sshll.u32 %s3194_s24, 4  ;;  %p3077_p0 = scmp.ne.s32.totalorder %s3745_s1, %s3076_s28  ;;  %s34_s25 = int_to_ptr.vmem [resolvable:$true] %s33_s25 }
   0x5   :  { %p3080_p1 = scmp.lt.u32.totalorder %s3076_s28, %s3745_s1 }
   0x7   :  { %p3082_p2 = pnand %p3080_p1, %p3077_p0 }
   0x9   :  { %3085 = shalt.err (!%p3082_p2)
}
   0xa   :  { %s3086_s10 = scalar_lea.vmem %s34_s25, 6144  ;;  %p3091_p4 = scmp.lt.s32.totalorder %s34_s25, %s34_s25 }
   0xb   :  { %p3087_p3 = scmp.ne.s32.totalorder %s34_s25, %s3086_s10  ;;  %p3092_p5 = scmp.lt.s32.totalorder %s3086_s10, %s3086_s10 }
   0xd   :  { %p3093_p6 = por %p3092_p5, %p3091_p4 }
   0xf   :  { %p3094_p7 = pnand %p3093_p6, %p3087_p3 }
  0x11   :  { %3097 = shalt.err (!%p3094_p7)
}
  0x12   :  { %s3195_s11 = smov 384   ;;  %s3196_s12 = smov 24  }
  0x13   :  { %39 = dma.hbm_to_vmem [thread:$0]  %s3745_s1, 6144, %s34_s25, [#allocation7], %s3195_s11, %s3195_s11, %s3196_s12  }
  0x14   :  { %s3197_s15 = smov [#allocation3]   ;;  %s3098_s19 = scalar_lea.hbm %s3744_s0, 1024 }
  0x15   :  { %s21_s16 = sshll.u32 %s3197_s15, 4  ;;  %p3099_p8 = scmp.ne.s32.totalorder %s3744_s0, %s3098_s19  ;;  %s22_s16 = int_to_ptr.vmem [resolvable:$true] %s21_s16 }
  0x16   :  { %p3102_p9 = scmp.lt.u32.totalorder %s3098_s19, %s3744_s0 }
  0x18   :  { %p3104_p10 = pnand %p3102_p9, %p3099_p8 }
  0x1a   :  { %3107 = shalt.err (!%p3104_p10)
}
  0x1b   :  { %s3108_s24 = scalar_lea.vmem %s22_s16, 1024  ;;  %p3113_p12 = scmp.lt.s32.totalorder %s22_s16, %s22_s16 }
  0x1c   :  { %p3109_p11 = scmp.ne.s32.totalorder %s22_s16, %s3108_s24  ;;  %p3114_p13 = scmp.lt.s32.totalorder %s3108_s24, %s3108_s24 }
  0x1e   :  { %p3115_p0 = por %p3114_p13, %p3113_p12 }
  0x20   :  { %p3116_p1 = pnand %p3115_p0, %p3109_p11 }
  0x22   :  { %3119 = shalt.err (!%p3116_p1)
}
  0x23   :  { %s3198_s1 = smov 128   ;;  %s3199_s25 = smov 8  }
  0x24   :  { %27 = dma.hbm_to_vmem [thread:$0]  %s3744_s0, 1024, %s22_s16, [#allocation4], %s3198_s1, %s3198_s1, %s3199_s25  }
  0x25   :  { %s3200_s28 = smov [#allocation8]   ;;  %s3201_s30 = smov [#allocation9]  }
  0x26   :  { %s45_s29 = sshll.u32 %s3200_s28, 4  ;;  %s61_s8 = sshll.u32 %s3201_s30, 4  ;;  %s46_s29 = int_to_ptr.vmem [resolvable:$true] %s45_s29  ;;  %s3276_s8 = int_to_ptr.vmem [resolvable:$true] %s61_s8 }
  0x27   :  { %s3120_s13 = scalar_lea.hbm %s3746_s2, 6144 }
  0x28   :  { %p3121_p2 = scmp.ne.s32.totalorder %s3746_s2, %s3120_s13  ;;  %p3124_p3 = scmp.lt.u32.totalorder %s3120_s13, %s3746_s2 }
  0x2a   :  { %p3126_p4 = pnand %p3124_p3, %p3121_p2 }
  0x2c   :  { %3129 = shalt.err (!%p3126_p4)
}
  0x2d   :  { %s3130_s0 = scalar_lea.vmem %s46_s29, 6144  ;;  %p3135_p6 = scmp.lt.s32.totalorder %s46_s29, %s46_s29 }
  0x2e   :  { %p3131_p5 = scmp.ne.s32.totalorder %s46_s29, %s3130_s0  ;;  %p3136_p7 = scmp.lt.s32.totalorder %s3130_s0, %s3130_s0 }
  0x30   :  { %p3137_p8 = por %p3136_p7, %p3135_p6 }
  0x32   :  { %p3138_p9 = pnand %p3137_p8, %p3131_p5 }
  0x34   :  { %3141 = shalt.err (!%p3138_p9)
}
  0x35   :  { %51 = dma.hbm_to_vmem [thread:$0]  %s3746_s2, 6144, %s46_s29, [#allocation7], %s3195_s11, %s3195_s11, %s3196_s12  }
  0x36   :  { %s3142_s22 = scalar_lea.hbm %s3749_s5, 2048 }
  0x37   :  { %p3143_p10 = scmp.ne.s32.totalorder %s3749_s5, %s3142_s22  ;;  %p3146_p11 = scmp.lt.u32.totalorder %s3142_s22, %s3749_s5 }
  0x39   :  { %p3148_p12 = pnand %p3146_p11, %p3143_p10 }
  0x3b   :  { %3151 = shalt.err (!%p3148_p12)
}
  0x3c   :  { %s3152_s28 = scalar_lea.vmem %s3276_s8, 2048  ;;  %p3157_p0 = scmp.lt.s32.totalorder %s3276_s8, %s3276_s8 }
  0x3d   :  { %p3153_p13 = scmp.ne.s32.totalorder %s3276_s8, %s3152_s28  ;;  %p3158_p1 = scmp.lt.s32.totalorder %s3152_s28, %s3152_s28 }
  0x3f   :  { %p3159_p2 = por %p3158_p1, %p3157_p0 }
  0x41   :  { %p3160_p3 = pnand %p3159_p2, %p3153_p13 }
  0x43   :  { %3163 = shalt.err (!%p3160_p3)
}
  0x44   :  { %67 = dma.hbm_to_vmem [thread:$0]  %s3749_s5, 2048, %s3276_s8, [#allocation10], %s3198_s1, %s3198_s1, %s3199_s25  }
  0x45   :  { %3186 = dma.done.wait [#allocation4], 1024  }
  0x46   :  { %3187 = vsyncadd [#allocation4], 4294966272 }
  0x47   :  { %3188 = dma.done.wait [#allocation7], 12288  }
  0x48   :  { %3189 = vsyncadd [#allocation7], 4294955008 }
  0x49   :  { %3190 = dma.done.wait [#allocation10], 2048  }
  0x4a   :  { %3191 = vsyncadd [#allocation10], 4294965248  ;;  %v3202_v0 = vmov 0.0   ;;  %v96_v1 = vld [vmem:[#allocation6 + $0x8] sm:$0xff]  ;;  %v99_v2 = vld [vmem:[#allocation6 + $0x20] sm:$0xff]  ;;  %vm3204_vm0 = vmmov 0  }
  0x4b   :  { %224 = vmatprep.mubr.f32.mxu0 %v3202_v0  ;;  %v95_v3 = vld [vmem:[#allocation6] sm:$0xff]  ;;  %v2412_v4 = vpack.c.bf16 %v99_v2, %v96_v1  ;;  %v98_v5 = vld [vmem:[#allocation6 + $0x18] sm:$0xff]  ;;  %v105_v7 = vld [vmem:[#allocation6 + $0x50] sm:$0xff]  ;;  %s3205_s29 = smov [#allocation11]  }
  0x4c   :  { %v102_v6 = vld [vmem:[#allocation6 + $0x38] sm:$0xff]  ;;  %v2414_v8 = vpack.c.bf16 %v98_v5, %v95_v3  ;;  %v101_v10 = vld [vmem:[#allocation6 + $0x30] sm:$0xff]  ;;  %v104_v11 = vld [vmem:[#allocation6 + $0x48] sm:$0xff]  ;;  %s1847_s30 = sshll.u32 %s3205_s29, 4  ;;  %s1848_s30 = int_to_ptr.vmem [resolvable:$true] %s1847_s30 }
  0x4d   :  { %v2416_v9 = vpack.c.bf16 %v105_v7, %v102_v6  ;;  %v108_v12 = vld [vmem:[#allocation6 + $0x68] sm:$0xff]  ;;  %2413 = vmatprep.subr.bf16.mxu0 %v2412_v4  ;;  %v111_v13 = vld [vmem:[#allocation6 + $0x80] sm:$0xff]  ;;  %v2418_v14 = vpack.c.bf16 %v104_v11, %v101_v10  ;;  %v110_v17 = vld [vmem:[#allocation6 + $0x78] sm:$0xff]  ;;  %p3169_p5 = scmp.lt.s32.totalorder %s1848_s30, %s1848_s30 }
  0x4e   :  { %2415 = vmatpush1.bf16.msra.mxu0 %v2414_v8  ;;  %v2420_v15 = vpack.c.bf16 %v111_v13, %v108_v12  ;;  %v107_v16 = vld [vmem:[#allocation6 + $0x60] sm:$0xff]  ;;  %v114_v18 = vld [vmem:[#allocation6 + $0x98] sm:$0xff]  ;;  %v117_v19 = vld [vmem:[#allocation6 + $0xb0] sm:$0xff] }
  0x4f   :  { %2417 = vmatprep.subr.bf16.mxu0 %v2416_v9  ;;  %v2422_v20 = vpack.c.bf16 %v110_v17, %v107_v16  ;;  %v113_v21 = vld [vmem:[#allocation6 + $0x90] sm:$0xff]  ;;  %v2424_v22 = vpack.c.bf16 %v117_v19, %v114_v18  ;;  %v116_v23 = vld [vmem:[#allocation6 + $0xa8] sm:$0xff]  ;;  %v123_v27 = vld [vmem:[#allocation6 + $0xe0] sm:$0xff] }
  0x50   :  { %v97_v24 = vld [vmem:[#allocation6 + $0x10] sm:$0xff]  ;;  %v100_v25 = vld [vmem:[#allocation6 + $0x28] sm:$0xff]  ;;  %v103_v29 = vld [vmem:[#allocation6 + $0x40] sm:$0xff]  ;;  %v2426_v31 = vpack.c.bf16 %v116_v23, %v113_v21 }
  0x51   :  { %v120_v26 = vld [vmem:[#allocation6 + $0xc8] sm:$0xff]  ;;  %v2444_v28 = vpack.c.bf16 %v100_v25, %v97_v24  ;;  %v106_v30 = vld [vmem:[#allocation6 + $0x58] sm:$0xff]  ;;  %v119_v32 = vld [vmem:[#allocation6 + $0xc0] sm:$0xff] }
  0x52   :  { %2419 = vmatpush1.bf16.msra.mxu0 %v2418_v14  ;;  %v2448_v33 = vpack.c.bf16 %v106_v30, %v103_v29  ;;  %v2428_v34 = vpack.c.bf16 %v123_v27, %v120_v26  ;;  %v122_v35 = vld [vmem:[#allocation6 + $0xd8] sm:$0xff]  ;;  %v3314_v36 = vld [vmem:[#allocation3] sm:$0xff]  ;;  %v109_v37 = vld [vmem:[#allocation6 + $0x70] sm:$0xff] }
  0x53   :  { %2421 = vmatprep.subr.bf16.mxu0 %v2420_v15  ;;  %2445 = vmatprep.subr.bf16.mxu1 %v2444_v28  ;;  %v126_v38 = vld [vmem:[#allocation6 + $0xf8] sm:$0xff]  ;;  %v129_v39 = vld [vmem:[#allocation6 + $0x110] sm:$0xff]  ;;  %v112_v40 = vld [vmem:[#allocation6 + $0x88] sm:$0xff]  ;;  %v2430_v42 = vpack.c.bf16 %v122_v35, %v119_v32 }
  0x54   :  { %2447 = vmatpush3.bf16.msra.mxu1 %v2444_v28  ;;  %2085 = vmatprep.mubr.f32.mxu1 %v3314_v36  ;;  %v2452_v41 = vpack.c.bf16 %v112_v40, %v109_v37  ;;  %v115_v43 = vld [vmem:[#allocation6 + $0xa0] sm:$0xff]  ;;  %v118_v44 = vld [vmem:[#allocation6 + $0xb8] sm:$0xff]  ;;  %v2432_v45 = vpack.c.bf16 %v129_v39, %v126_v38  ;;  %v125_v46 = vld [vmem:[#allocation6 + $0xf0] sm:$0xff]  ;;  %v3203_v40 = vmov 0.0|0.0  }
  0x55   :  { %2449 = vmatprep.subr.bf16.mxu1 %v2448_v33  ;;  %v128_v47 = vld [vmem:[#allocation6 + $0x108] sm:$0xff]  ;;  %v135_v49 = vld [vmem:[#allocation6 + $0x140] sm:$0xff]  ;;  %v2456_v50 = vpack.c.bf16 %v118_v44, %v115_v43  ;;  %v121_v51 = vld [vmem:[#allocation6 + $0xd0] sm:$0xff] }
  0x56   :  { %2423 = vmatpush1.bf16.msra.mxu0 %v2422_v20  ;;  %v132_v48 = vld [vmem:[#allocation6 + $0x128] sm:$0xff]  ;;  %v2434_v53 = vpack.c.bf16 %v128_v47, %v125_v46  ;;  %v131_v55 = vld [vmem:[#allocation6 + $0x120] sm:$0xff]  ;;  %v134_v56 = vld [vmem:[#allocation6 + $0x138] sm:$0xff] }
  0x57   :  { %2425 = vmatprep.subr.bf16.mxu0 %v2424_v22  ;;  %v124_v52 = vld [vmem:[#allocation6 + $0xe8] sm:$0xff]  ;;  %v2436_v54 = vpack.c.bf16 %v135_v49, %v132_v48  ;;  %v138_v57 = vld [vmem:[#allocation6 + $0x158] sm:$0xff]  ;;  %v141_v58 = vld [vmem:[#allocation6 + $0x170] sm:$0xff]  ;;  %v2438_v62 = vpack.c.bf16 %v134_v56, %v131_v55 }
  0x58   :  { %2451 = vmatpush3.bf16.msra.mxu1 %v2448_v33  ;;  %v2460_v59 = vpack.c.bf16 %v124_v52, %v121_v51  ;;  %v127_v60 = vld [vmem:[#allocation6 + $0x100] sm:$0xff]  ;;  %v130_v61 = vld [vmem:[#allocation6 + $0x118] sm:$0xff]  ;;  %v2440_v63 = vpack.c.bf16 %v141_v58, %v138_v57  ;;  %v137_v1 = vld [vmem:[#allocation6 + $0x150] sm:$0xff] }
  0x59   :  { %2453 = vmatprep.subr.bf16.mxu1 %v2452_v41  ;;  %v140_v2 = vld [vmem:[#allocation6 + $0x168] sm:$0xff]  ;;  %v382_v4 = vld [vmem:[#allocation8 + $0x20] sm:$0xff]  ;;  %v2464_v5 = vpack.c.bf16 %v130_v61, %v127_v60  ;;  %v133_v6 = vld [vmem:[#allocation6 + $0x130] sm:$0xff] }
  0x5a   :  { %2427 = vmatpush1.bf16.msra.mxu0 %v2426_v31  ;;  %v379_v3 = vld [vmem:[#allocation8 + $0x8] sm:$0xff]  ;;  %v2442_v8 = vpack.c.bf16 %v140_v2, %v137_v1  ;;  %v378_v10 = vld [vmem:[#allocation8] sm:$0xff]  ;;  %v381_v11 = vld [vmem:[#allocation8 + $0x18] sm:$0xff] }
  0x5b   :  { %2429 = vmatprep.subr.bf16.mxu0 %v2428_v34  ;;  %v136_v7 = vld [vmem:[#allocation6 + $0x148] sm:$0xff]  ;;  %v3317_v9 = vpack.c.bf16 %v382_v4, %v379_v3  ;;  %v385_v12 = vld [vmem:[#allocation8 + $0x38] sm:$0xff]  ;;  %v388_v13 = vld [vmem:[#allocation8 + $0x50] sm:$0xff]  ;;  %v3319_v17 = vpack.c.bf16 %v381_v11, %v378_v10 }
  0x5c   :  { %2455 = vmatpush3.bf16.msra.mxu1 %v2452_v41  ;;  %v2468_v14 = vpack.c.bf16 %v136_v7, %v133_v6  ;;  %v139_v15 = vld [vmem:[#allocation6 + $0x160] sm:$0xff]  ;;  %v142_v16 = vld [vmem:[#allocation6 + $0x178] sm:$0xff]  ;;  %v3322_v18 = vpack.c.bf16 %v388_v13, %v385_v12  ;;  %v384_v19 = vld [vmem:[#allocation8 + $0x30] sm:$0xff] }
  0x5d   :  { %2457 = vmatprep.subr.bf16.mxu1 %v2456_v50  ;;  %v387_v20 = vld [vmem:[#allocation8 + $0x48] sm:$0xff]  ;;  %v394_v22 = vld [vmem:[#allocation8 + $0x80] sm:$0xff]  ;;  %v2472_v23 = vpack.c.bf16 %v142_v16, %v139_v15  ;;  %v393_v28 = vld [vmem:[#allocation8 + $0x78] sm:$0xff] }
  0x5e   :  { %2431 = vmatpush1.bf16.msra.mxu0 %v2430_v42  ;;  %v391_v21 = vld [vmem:[#allocation8 + $0x68] sm:$0xff]  ;;  %v3327_v25 = vpack.c.bf16 %v387_v20, %v384_v19  ;;  %v390_v27 = vld [vmem:[#allocation8 + $0x60] sm:$0xff]  ;;  %v397_v29 = vld [vmem:[#allocation8 + $0x98] sm:$0xff] }
  0x5f   :  { %2433 = vmatprep.subr.bf16.mxu0 %v2432_v45  ;;  %v88_v24 = vld [vmem:[#allocation3 + $0x8] sm:$0xff]  ;;  %v3330_v26 = vpack.c.bf16 %v394_v22, %v391_v21  ;;  %v400_v30 = vld [vmem:[#allocation8 + $0xb0] sm:$0xff]  ;;  %v3334_v34 = vpack.c.bf16 %v393_v28, %v390_v27  ;;  %v406_v39 = vld [vmem:[#allocation8 + $0xe0] sm:$0xff] }
  0x60   :  { %2459 = vmatpush3.bf16.msra.mxu1 %v2456_v50  ;;  %v380_v31 = vld [vmem:[#allocation8 + $0x10] sm:$0xff]  ;;  %v383_v32 = vld [vmem:[#allocation8 + $0x28] sm:$0xff]  ;;  %v3337_v35 = vpack.c.bf16 %v400_v30, %v397_v29  ;;  %v386_v42 = vld [vmem:[#allocation8 + $0x40] sm:$0xff] }
  0x61   :  { %2461 = vmatprep.subr.bf16.mxu1 %v2460_v59  ;;  %v89_v33 = vld [vmem:[#allocation3 + $0x10] sm:$0xff]  ;;  %v399_v37 = vld [vmem:[#allocation8 + $0xa8] sm:$0xff]  ;;  %v3340_v41 = vpack.c.bf16 %v383_v32, %v380_v31  ;;  %v389_v43 = vld [vmem:[#allocation8 + $0x58] sm:$0xff] }
  0x62   :  { %2435 = vmatpush1.bf16.msra.mxu0 %v2434_v53  ;;  %v403_v38 = vld [vmem:[#allocation8 + $0xc8] sm:$0xff]  ;;  %v90_v44 = vld [vmem:[#allocation3 + $0x18] sm:$0xff]  ;;  %v402_v47 = vld [vmem:[#allocation8 + $0xc0] sm:$0xff]  ;;  %v3350_v51 = vpack.c.bf16 %v389_v43, %v386_v42 }
  0x63   :  { %2437 = vmatprep.subr.bf16.mxu0 %v2436_v54  ;;  %v3347_v46 = vpack.c.bf16 %v406_v39, %v403_v38  ;;  %v405_v48 = vld [vmem:[#allocation8 + $0xd8] sm:$0xff]  ;;  %v412_v50 = vld [vmem:[#allocation8 + $0x110] sm:$0xff]  ;;  %v395_v53 = vld [vmem:[#allocation8 + $0x88] sm:$0xff] }
  0x64   :  { %2463 = vmatpush3.bf16.msra.mxu1 %v2460_v59  ;;  %v409_v49 = vld [vmem:[#allocation8 + $0xf8] sm:$0xff]  ;;  %v392_v52 = vld [vmem:[#allocation8 + $0x70] sm:$0xff]  ;;  %v91_v54 = vld [vmem:[#allocation3 + $0x20] sm:$0xff]  ;;  %v3355_v55 = vpack.c.bf16 %v405_v48, %v402_v47 }
  0x65   :  { %2465 = vmatprep.subr.bf16.mxu1 %v2464_v5  ;;  %v3358_v56 = vpack.c.bf16 %v412_v50, %v409_v49  ;;  %v408_v57 = vld [vmem:[#allocation8 + $0xf0] sm:$0xff]  ;;  %v411_v58 = vld [vmem:[#allocation8 + $0x108] sm:$0xff]  ;;  %v418_v60 = vld [vmem:[#allocation8 + $0x140] sm:$0xff]  ;;  %v3361_v61 = vpack.c.bf16 %v395_v53, %v392_v52 }
  0x66   :  { %2439 = vmatpush1.bf16.msra.mxu0 %v2438_v62  ;;  %v415_v59 = vld [vmem:[#allocation8 + $0x128] sm:$0xff]  ;;  %v398_v62 = vld [vmem:[#allocation8 + $0xa0] sm:$0xff]  ;;  %v3366_v2 = vpack.c.bf16 %v411_v58, %v408_v57  ;;  %v93_v3 = vld [vmem:[#allocation3 + $0x30] sm:$0xff] }
  0x67   :  { %2441 = vmatprep.subr.bf16.mxu0 %v2440_v63  ;;  %v401_v63 = vld [vmem:[#allocation8 + $0xb8] sm:$0xff]  ;;  %v92_v1 = vld [vmem:[#allocation3 + $0x28] sm:$0xff]  ;;  %v3369_v4 = vpack.c.bf16 %v418_v60, %v415_v59  ;;  %v404_v11 = vld [vmem:[#allocation8 + $0xd0] sm:$0xff] }
  0x68   :  { %2467 = vmatpush3.bf16.msra.mxu1 %v2464_v5  ;;  %v414_v5 = vld [vmem:[#allocation8 + $0x120] sm:$0xff]  ;;  %v417_v6 = vld [vmem:[#allocation8 + $0x138] sm:$0xff]  ;;  %v3372_v10 = vpack.c.bf16 %v401_v63, %v398_v62  ;;  %v407_v12 = vld [vmem:[#allocation8 + $0xe8] sm:$0xff] }
  0x69   :  { %2469 = vmatprep.subr.bf16.mxu1 %v2468_v14  ;;  %v421_v7 = vld [vmem:[#allocation8 + $0x158] sm:$0xff]  ;;  %v3377_v13 = vpack.c.bf16 %v417_v6, %v414_v5  ;;  %v420_v16 = vld [vmem:[#allocation8 + $0x150] sm:$0xff]  ;;  %v423_v19 = vld [vmem:[#allocation8 + $0x168] sm:$0xff]  ;;  %v3383_v20 = vpack.c.bf16 %v407_v12, %v404_v11 }
  0x6a   :  { %2443 = vmatpush1.bf16.msra.mxu0 %v2442_v8  ;;  %v424_v8 = vld [vmem:[#allocation8 + $0x170] sm:$0xff]  ;;  %v410_v21 = vld [vmem:[#allocation8 + $0x100] sm:$0xff]  ;;  %v413_v22 = vld [vmem:[#allocation8 + $0x118] sm:$0xff] }
  0x6b   :  { %2477 = vmatprep.subr.bf16.mxu0 %v3317_v9  ;;  %v3380_v15 = vpack.c.bf16 %v424_v8, %v421_v7  ;;  %v416_v27 = vld [vmem:[#allocation8 + $0x130] sm:$0xff]  ;;  %v419_v28 = vld [vmem:[#allocation8 + $0x148] sm:$0xff]  ;;  %v422_v30 = vld [vmem:[#allocation8 + $0x160] sm:$0xff] }
  0x6c   :  { %2471 = vmatpush3.bf16.msra.mxu1 %v2468_v14  ;;  %v94_v14 = vld [vmem:[#allocation3 + $0x38] sm:$0xff]  ;;  %v3401_v29 = vpack.c.bf16 %v419_v28, %v416_v27  ;;  %v143_v38 = vld [vmem:[%s3747_s3] sm:$0x7] }
  0x6d   :  { %225 = vmatmul.mubr.f32.vlgmr.msra.gmra.mrb[0].mxu0 %v3314_v36  ;;  %2473 = vmatprep.subr.bf16.mxu1 %v2472_v23  ;;  %v396_v36 = vld [vmem:[#allocation8 + $0x90] sm:$0xff]  ;;  %v425_v31 = vld [vmem:[#allocation8 + $0x178] sm:$0xff]  ;;  %v3474_v27 = vld [vmem:[%s3748_s4] ss:$0 sm:$0xff] }
  0x6e   :  { %2479 = vmatpush1.bf16.msra.mxu0 %v3319_v17  ;;  %230 = vmatprep.mubr.f32.mxu0 %v3202_v0  ;;  %v3344_v45 = vpack.c.bf16 %v399_v37, %v396_v36  ;;  %v3409_v32 = vpack.c.bf16 %v425_v31, %v422_v30 }
  0x6f   :  { %2481 = vmatprep.subr.bf16.mxu0 %v3322_v18 }
  0x70   :  { %2475 = vmatpush3.bf16.msra.mxu1 %v2472_v23  ;;  %v3390_v23 = vpack.c.bf16 %v423_v19, %v420_v16 }
  0x71   :  { %231 = vmatmul.mubr.f32.gmra.mrb[2].mxu0 %v88_v24  ;;  %2508 = vmatprep.subr.bf16.mxu1 %v3203_v40 }
  0x72   :  { %2483 = vmatpush1.bf16.msra.mxu0 %v3327_v25  ;;  %236 = vmatprep.mubr.f32.mxu0 %v3202_v0 }
  0x73   :  { %2485 = vmatprep.subr.bf16.mxu0 %v3330_v26  ;;  %2086 = vmatmul.mubr.f32.vlgmr.msra.gmra.mrb[0].mxu1 %v88_v24  ;;  %v3394_v24 = vpack.c.bf16 %v413_v22, %v410_v21 }
  0x74   :  { %2510 = vmatpush3.bf16.msra.mxu1 %v3340_v41  ;;  %2088 = vmatprep.mubr.f32.mxu1 %v89_v33 }
  0x75   :  { %237 = vmatmul.mubr.f32.gmra.mrb[4].mxu0 %v89_v33  ;;  %2511 = vmatprep.subr.bf16.mxu1 %v3203_v40  ;;  %v145_v33 = vlaneseq }
  0x76   :  { %2487 = vmatpush1.bf16.msra.mxu0 %v3334_v34  ;;  %242 = vmatprep.mubr.f32.mxu0 %v3202_v0 }
  0x77   :  { %2489 = vmatprep.subr.bf16.mxu0 %v3337_v35  ;;  %2089 = vmatmul.mubr.f32.gmra.mrb[2].mxu1 %v90_v44  ;;  %v146_v36 = vshrl.u32 %v145_v33, 7 }
  0x78   :  { %2513 = vmatpush3.bf16.msra.mxu1 %v3350_v51  ;;  %2091 = vmatprep.mubr.f32.mxu1 %v91_v54 }
  0x79   :  { %243 = vmatmul.mubr.f32.gmra.mrb[6].mxu0 %v90_v44  ;;  %2514 = vmatprep.subr.bf16.mxu1 %v3203_v40  ;;  %v155_v37 = vsub.s32 2, %v146_v36  ;;  %v147_v63 = vsub.s32 0, %v146_v36  ;;  %v151_v6 = vsub.s32 1, %v146_v36 }
  0x7a   :  { %2491 = vmatpush1.bf16.msra.mxu0 %v3344_v45  ;;  %248 = vmatprep.mubr.f32.mxu0 %v3202_v0 }
  0x7b   :  { %2493 = vmatprep.subr.bf16.mxu0 %v3347_v46  ;;  %2092 = vmatmul.mubr.f32.gmra.mrb[4].mxu1 %v92_v1  ;;  %v156_v39 = vrot.slane %v143_v38, %v155_v37  ;;  %v3468_v11 = vrot.slane %v143_v38, %v151_v6 }
  0x7c   :  { %2516 = vmatpush3.bf16.msra.mxu1 %v3361_v61  ;;  %2094 = vmatprep.mubr.f32.mxu1 %v93_v3 }
  0x7d   :  { %249 = vmatmul.mubr.f32.gmra.mrb[8].mxu0 %v91_v54  ;;  %2517 = vmatprep.subr.bf16.mxu1 %v3203_v40 }
  0x7e   :  { %2495 = vmatpush1.bf16.msra.mxu0 %v3355_v55  ;;  %254 = vmatprep.mubr.f32.mxu0 %v3202_v0 }
  0x7f   :  { %2497 = vmatprep.subr.bf16.mxu0 %v3358_v56  ;;  %2095 = vmatmul.mubr.f32.gmra.mrb[6].mxu1 %v94_v14 }
  0x80   :  { %2519 = vmatpush3.bf16.msra.mxu1 %v3372_v10  ;;  %2129 = vmatprep.mubr.msk.f32.mxu1 %vm3204_vm0, %v3202_v0 }
  0x81   :  { %255 = vmatmul.mubr.f32.gmra.mrb[10].mxu0 %v92_v1  ;;  %2520 = vmatprep.subr.bf16.mxu1 %v3203_v40  ;;  %v3465_v1 = vrot.slane %v143_v38, %v147_v63 }
  0x82   :  { %2499 = vmatpush1.bf16.msra.mxu0 %v3366_v2  ;;  %260 = vmatprep.mubr.f32.mxu0 %v3202_v0 }
  0x83   :  { %2501 = vmatprep.subr.bf16.mxu0 %v3369_v4 }
  0x84   :  { %2522 = vmatpush3.bf16.msra.mxu1 %v3383_v20 }
  0x85   :  { %261 = vmatmul.mubr.f32.gmra.mrb[12].mxu0 %v93_v3  ;;  %2523 = vmatprep.subr.bf16.mxu1 %v3203_v40 }
  0x86   :  { %2503 = vmatpush1.bf16.msra.mxu0 %v3377_v13  ;;  %266 = vmatprep.mubr.f32.mxu0 %v3202_v0 }
  0x87   :  { %2505 = vmatprep.subr.bf16.mxu0 %v3380_v15 }
  0x88   :  { %2525 = vmatpush3.bf16.msra.mxu1 %v3394_v24 }
  0x89   :  { %267 = vmatmul.mubr.f32.gmra.mrb[14].mxu0 %v94_v14  ;;  %2526 = vmatprep.subr.bf16.mxu1 %v3203_v40 }
  0x8a   :  { %2507 = vmatpush1.bf16.msra.mxu0 %v3390_v23  ;;  %498 = vmatprep.mubr.f32.mxu0 %v3202_v0 }
  0x8b   :  { %2533 = vmatprep.subr.bf16.mxu0 %v3317_v9 }
  0x8c   :  { %2528 = vmatpush3.bf16.msra.mxu1 %v3401_v29 }
  0x8d   :  { %499 = vmatmul.mubr.f32.vlgmr.msra.gmra.mrb[0].mxu0 %v3202_v0  ;;  %2529 = vmatprep.subr.bf16.mxu1 %v3203_v40 }
  0x8e   :  { %2535 = vmatpush1.bf16.msra.mxu0 %v3319_v17  ;;  %660 = vmatprep.mubr.f32.mxu0 %v3202_v0 }
  0x8f   :  { %2537 = vmatprep.subr.bf16.mxu0 %v3322_v18 }
  0x90   :  { %2531 = vmatpush3.bf16.msra.mxu1 %v3409_v32 }
  0x91   :  { %2564 = vmatprep.subr.bf16.mxu1 %v3203_v40 }
  0x92   :  { %2539 = vmatpush1.bf16.msra.mxu0 %v3327_v25 }
  0x93   :  { %2541 = vmatprep.subr.bf16.mxu0 %v3330_v26  ;;  %2130 = vmatmul.mubr.f32.vlgmr.msra.gmra.mrb[8].mxu1 %v3202_v0 }
  0x94   :  { %2566 = vmatpush3.bf16.msra.mxu1 %v3340_v41  ;;  %2164 = vmatprep.mubr.msk.f32.mxu1 %vm3204_vm0, %v3202_v0 }
  0x95   :  { %2567 = vmatprep.subr.bf16.mxu1 %v3203_v40 }
  0x96   :  { %2543 = vmatpush1.bf16.msra.mxu0 %v3334_v34 }
  0x97   :  { %2545 = vmatprep.subr.bf16.mxu0 %v3337_v35 }
  0x98   :  { %2569 = vmatpush3.bf16.msra.mxu1 %v3350_v51 }
  0x99   :  { %2570 = vmatprep.subr.bf16.mxu1 %v3203_v40 }
  0x9a   :  { %2547 = vmatpush1.bf16.msra.mxu0 %v3344_v45 }
  0x9b   :  { %2549 = vmatprep.subr.bf16.mxu0 %v3347_v46 }
  0x9c   :  { %2572 = vmatpush3.bf16.msra.mxu1 %v3361_v61 }
  0x9d   :  { %2573 = vmatprep.subr.bf16.mxu1 %v3203_v40 }
  0x9e   :  { %2551 = vmatpush1.bf16.msra.mxu0 %v3355_v55 }
  0x9f   :  { %2553 = vmatprep.subr.bf16.mxu0 %v3358_v56 }
  0xa0   :  { %2575 = vmatpush3.bf16.msra.mxu1 %v3372_v10 }
  0xa1   :  { %2576 = vmatprep.subr.bf16.mxu1 %v3203_v40 }
  0xa2   :  { %2555 = vmatpush1.bf16.msra.mxu0 %v3366_v2 }
  0xa3   :  { %2557 = vmatprep.subr.bf16.mxu0 %v3369_v4 }
  0xa4   :  { %2578 = vmatpush3.bf16.msra.mxu1 %v3383_v20 }
  0xa5   :  { %2579 = vmatprep.subr.bf16.mxu1 %v3203_v40 }
  0xa6   :  { %2559 = vmatpush1.bf16.msra.mxu0 %v3377_v13 }
  0xa7   :  { %2561 = vmatprep.subr.bf16.mxu0 %v3380_v15 }
  0xa8   :  { %2581 = vmatpush3.bf16.msra.mxu1 %v3394_v24 }
  0xa9   :  { %2582 = vmatprep.subr.bf16.mxu1 %v3203_v40 }
  0xaa   :  { %2563 = vmatpush1.bf16.msra.mxu0 %v3390_v23 }
  0xab   :  { %2589 = vmatprep.subr.bf16.mxu0 %v3317_v9 }
  0xac   :  { %2584 = vmatpush3.bf16.msra.mxu1 %v3401_v29 }
  0xad   :  { %2585 = vmatprep.subr.bf16.mxu1 %v3203_v40 }
  0xb0   :  { %2587 = vmatpush3.bf16.msra.mxu1 %v3409_v32 }
  0xb1   :  { %2620 = vmatprep.subr.bf16.mxu1 %v3203_v40 }
 0x146   :  { %v2087_v42 = vpop.f32.mrb[0].mxu1 }
 0x147   :  { %v3451_v43 = vadd.f32 %v2087_v42, %v156_v39  ;;  %v339_v44 = vpop.f32.mrb[1].mxu1 }
 0x148   :  { %v340_v36 = vadd.f32 %v339_v44, %v156_v39 }
 0x14a   :  { %v2090_v47 = vpop.f32.mrb[2].mxu1 }
 0x14b   :  { %v3453_v48 = vadd.f32 %v2090_v47, %v156_v39  ;;  %v349_v49 = vpop.f32.mrb[3].mxu1 }
 0x14c   :  { %v3455_v50 = vadd.f32 %v349_v49, %v156_v39 }
 0x14e   :  { %v2093_v52 = vpop.f32.mrb[4].mxu1 }
 0x14f   :  { %v3457_v53 = vadd.f32 %v2093_v52, %v156_v39  ;;  %v359_v54 = vpop.f32.mrb[5].mxu1 }
 0x150   :  { %v3459_v57 = vadd.f32 %v359_v54, %v156_v39 }
 0x152   :  { %v2096_v58 = vpop.f32.mrb[6].mxu1 }
 0x153   :  { %v3461_v59 = vadd.f32 %v2096_v58, %v156_v39  ;;  %v369_v60 = vpop.f32.mrb[7].mxu1 }
 0x154   :  { %v3463_v62 = vadd.f32 %v369_v60, %v156_v39 }
 0x160   :  { %v500_v3 = vpop.f32.mrb[0].mxu0 }
 0x161   :  { %v2948_v5 = vadd.f32 %v500_v3, %v3465_v1  ;;  %v502_v7 = vpop.f32.mrb[1].mxu0 }
 0x162   :  { %v2949_v12 = vadd.f32 %v502_v7, %v3468_v11 }
 0x163   :  { %v1859_v8 = vmul.f32 -1.442695, %v2948_v5 }
 0x164   :  { %v1860_v19 = vmul.f32 -1.442695, %v2949_v12 }
 0x165   :  { %2992 = vpow2.f32 %v1859_v8 }
 0x166   :  { %v571_v14 = vpop.f32.mrb[8].mxu1  ;;  %2994 = vpow2.f32 %v1860_v19 }
 0x167   :  { %v2131_v16 = vpop.f32.mrb[9].mxu1  ;;  %v589_v28 = vadd.f32 %v3474_v27, %v571_v14 }
 0x16f   :  { %v2993_v21 = vpop.eup %2992 }
 0x170   :  { %v579_v22 = vadd.f32 1.0, %v2993_v21  ;;  %v2995_v30 = vpop.eup %2994 }
 0x171   :  { %v586_v38 = vadd.f32 1.0, %v2995_v30 }
 0x172   :  { %2996 = vrcp.f32 %v579_v22 }
 0x17c   :  { %v2997_v31 = vpop.eup %2996 }
 0x17d   :  { %v590_v37 = vmul.f32 %v2997_v31, %v589_v28 }
 0x17f   :  { %v591_v42 = vadd.f32 %v590_v37, %v340_v36 }
 0x181   :  { %2998 = vtanh.f32 %v591_v42 }
 0x182   :  { %3000 = vrcp.f32 %v586_v38 }
 0x18b   :  { %v2999_v47 = vpop.eup %2998 }
 0x18c   :  { %v593_v49 = vsub.f32 0.0, %v2999_v47  ;;  %v3001_v52 = vpop.eup %3000 }
 0x18e   :  { %v594_v54 = vmul.f32 %v3001_v52, %v593_v49 }
 0x190   :  { %v595_v58 = vadd.f32 %v2999_v47, %v594_v54 }
 0x192   :  { %661 = vmatmul.mubr.f32.vlgmr.msra.gmra.mrb[2].mxu0 %v595_v58  ;;  %2165 = vmatmul.mubr.f32.vlgmr.msra.gmra.mrb[10].mxu1 %v595_v58 }
 0x193   :  { %2591 = vmatpush1.bf16.msra.mxu0 %v3319_v17  ;;  %2622 = vmatpush3.bf16.msra.mxu1 %v3340_v41 }
 0x194   :  { %2593 = vmatprep.subr.bf16.mxu0 %v3322_v18  ;;  %2623 = vmatprep.subr.bf16.mxu1 %v3203_v40 }
 0x195   :  { %822 = vmatprep.mubr.f32.mxu0 %v3202_v0  ;;  %2199 = vmatprep.mubr.msk.f32.mxu1 %vm3204_vm0, %v3202_v0 }
 0x197   :  { %2595 = vmatpush1.bf16.msra.mxu0 %v3327_v25  ;;  %2625 = vmatpush3.bf16.msra.mxu1 %v3350_v51 }
 0x198   :  { %2597 = vmatprep.subr.bf16.mxu0 %v3330_v26  ;;  %2626 = vmatprep.subr.bf16.mxu1 %v3203_v40 }
 0x19b   :  { %2599 = vmatpush1.bf16.msra.mxu0 %v3334_v34  ;;  %2628 = vmatpush3.bf16.msra.mxu1 %v3361_v61 }
 0x19c   :  { %2601 = vmatprep.subr.bf16.mxu0 %v3337_v35  ;;  %2629 = vmatprep.subr.bf16.mxu1 %v3203_v40 }
 0x19f   :  { %2603 = vmatpush1.bf16.msra.mxu0 %v3344_v45  ;;  %2631 = vmatpush3.bf16.msra.mxu1 %v3372_v10 }
 0x1a0   :  { %2605 = vmatprep.subr.bf16.mxu0 %v3347_v46  ;;  %2632 = vmatprep.subr.bf16.mxu1 %v3203_v40 }
 0x1a3   :  { %2607 = vmatpush1.bf16.msra.mxu0 %v3355_v55  ;;  %2634 = vmatpush3.bf16.msra.mxu1 %v3383_v20 }
 0x1a4   :  { %2609 = vmatprep.subr.bf16.mxu0 %v3358_v56  ;;  %2635 = vmatprep.subr.bf16.mxu1 %v3203_v40 }
 0x1a7   :  { %2611 = vmatpush1.bf16.msra.mxu0 %v3366_v2  ;;  %2637 = vmatpush3.bf16.msra.mxu1 %v3394_v24 }
 0x1a8   :  { %2613 = vmatprep.subr.bf16.mxu0 %v3369_v4  ;;  %2638 = vmatprep.subr.bf16.mxu1 %v3203_v40 }
 0x1ab   :  { %2615 = vmatpush1.bf16.msra.mxu0 %v3377_v13  ;;  %2640 = vmatpush3.bf16.msra.mxu1 %v3401_v29 }
 0x1ac   :  { %2617 = vmatprep.subr.bf16.mxu0 %v3380_v15  ;;  %2641 = vmatprep.subr.bf16.mxu1 %v3203_v40 }
 0x1af   :  { %2619 = vmatpush1.bf16.msra.mxu0 %v3390_v23  ;;  %2643 = vmatpush3.bf16.msra.mxu1 %v3409_v32 }
 0x1b0   :  { %2645 = vmatprep.subr.bf16.mxu0 %v3317_v9  ;;  %2676 = vmatprep.subr.bf16.mxu1 %v3203_v40 }
 0x265   :  { %v662_v39 = vpop.f32.mrb[2].mxu0  ;;  %v733_v44 = vpop.f32.mrb[10].mxu1 }
 0x266   :  { %v2950_v60 = vadd.f32 %v662_v39, %v3465_v1  ;;  %v664_v63 = vpop.f32.mrb[3].mxu0  ;;  %v2166_v3 = vpop.f32.mrb[11].mxu1  ;;  %v751_v16 = vadd.f32 %v3474_v27, %v733_v44 }
 0x267   :  { %v2951_v6 = vadd.f32 %v664_v63, %v3468_v11 }
 0x268   :  { %v1861_v5 = vmul.f32 -1.442695, %v2950_v60 }
 0x269   :  { %v1862_v7 = vmul.f32 -1.442695, %v2951_v6 }
 0x26a   :  { %3002 = vpow2.f32 %v1861_v5 }
 0x26b   :  { %3004 = vpow2.f32 %v1862_v7 }
 0x274   :  { %v3003_v8 = vpop.eup %3002 }
 0x275   :  { %v741_v12 = vadd.f32 1.0, %v3003_v8  ;;  %v3005_v14 = vpop.eup %3004 }
 0x276   :  { %v748_v28 = vadd.f32 1.0, %v3005_v14 }
 0x277   :  { %3006 = vrcp.f32 %v741_v12 }
 0x281   :  { %v3007_v19 = vpop.eup %3006 }
 0x282   :  { %v752_v21 = vmul.f32 %v3007_v19, %v751_v16 }
 0x284   :  { %v753_v22 = vadd.f32 %v752_v21, %v3451_v43 }
 0x286   :  { %3008 = vtanh.f32 %v753_v22 }
 0x287   :  { %3010 = vrcp.f32 %v748_v28 }
 0x290   :  { %v3009_v30 = vpop.eup %3008 }
 0x291   :  { %v755_v31 = vsub.f32 %v595_v58, %v3009_v30  ;;  %v3011_v36 = vpop.eup %3010 }
 0x293   :  { %v756_v37 = vmul.f32 %v3011_v36, %v755_v31 }
 0x295   :  { %v757_v38 = vadd.f32 %v3009_v30, %v756_v37 }
 0x297   :  { %823 = vmatmul.mubr.f32.vlgmr.msra.gmra.mrb[4].mxu0 %v757_v38  ;;  %2200 = vmatmul.mubr.f32.vlgmr.msra.gmra.mrb[12].mxu1 %v757_v38 }
 0x298   :  { %2647 = vmatpush1.bf16.msra.mxu0 %v3319_v17  ;;  %2678 = vmatpush3.bf16.msra.mxu1 %v3340_v41 }
 0x299   :  { %2649 = vmatprep.subr.bf16.mxu0 %v3322_v18  ;;  %2679 = vmatprep.subr.bf16.mxu1 %v3203_v40 }
 0x29a   :  { %984 = vmatprep.mubr.f32.mxu0 %v3202_v0  ;;  %2234 = vmatprep.mubr.msk.f32.mxu1 %vm3204_vm0, %v3202_v0 }
 0x29c   :  { %2651 = vmatpush1.bf16.msra.mxu0 %v3327_v25  ;;  %2681 = vmatpush3.bf16.msra.mxu1 %v3350_v51 }
 0x29d   :  { %2653 = vmatprep.subr.bf16.mxu0 %v3330_v26  ;;  %2682 = vmatprep.subr.bf16.mxu1 %v3203_v40 }
 0x2a0   :  { %2655 = vmatpush1.bf16.msra.mxu0 %v3334_v34  ;;  %2684 = vmatpush3.bf16.msra.mxu1 %v3361_v61 }
 0x2a1   :  { %2657 = vmatprep.subr.bf16.mxu0 %v3337_v35  ;;  %2685 = vmatprep.subr.bf16.mxu1 %v3203_v40 }
 0x2a4   :  { %2659 = vmatpush1.bf16.msra.mxu0 %v3344_v45  ;;  %2687 = vmatpush3.bf16.msra.mxu1 %v3372_v10 }
 0x2a5   :  { %2661 = vmatprep.subr.bf16.mxu0 %v3347_v46  ;;  %2688 = vmatprep.subr.bf16.mxu1 %v3203_v40 }
 0x2a8   :  { %2663 = vmatpush1.bf16.msra.mxu0 %v3355_v55  ;;  %2690 = vmatpush3.bf16.msra.mxu1 %v3383_v20 }
 0x2a9   :  { %2665 = vmatprep.subr.bf16.mxu0 %v3358_v56  ;;  %2691 = vmatprep.subr.bf16.mxu1 %v3203_v40 }
 0x2ac   :  { %2667 = vmatpush1.bf16.msra.mxu0 %v3366_v2  ;;  %2693 = vmatpush3.bf16.msra.mxu1 %v3394_v24 }
 0x2ad   :  { %2669 = vmatprep.subr.bf16.mxu0 %v3369_v4  ;;  %2694 = vmatprep.subr.bf16.mxu1 %v3203_v40 }
 0x2b0   :  { %2671 = vmatpush1.bf16.msra.mxu0 %v3377_v13  ;;  %2696 = vmatpush3.bf16.msra.mxu1 %v3401_v29 }
 0x2b1   :  { %2673 = vmatprep.subr.bf16.mxu0 %v3380_v15  ;;  %2697 = vmatprep.subr.bf16.mxu1 %v3203_v40 }
 0x2b4   :  { %2675 = vmatpush1.bf16.msra.mxu0 %v3390_v23  ;;  %2699 = vmatpush3.bf16.msra.mxu1 %v3409_v32 }
 0x2b5   :  { %2701 = vmatprep.subr.bf16.mxu0 %v3317_v9  ;;  %2732 = vmatprep.subr.bf16.mxu1 %v3203_v40 }
 0x36a   :  { %v824_v43 = vpop.f32.mrb[4].mxu0  ;;  %v895_v42 = vpop.f32.mrb[12].mxu1 }
 0x36b   :  { %v2952_v47 = vadd.f32 %v824_v43, %v3465_v1  ;;  %v826_v49 = vpop.f32.mrb[5].mxu0  ;;  %v2201_v52 = vpop.f32.mrb[13].mxu1  ;;  %v913_v3 = vadd.f32 %v3474_v27, %v895_v42 }
 0x36c   :  { %v2953_v58 = vadd.f32 %v826_v49, %v3468_v11 }
 0x36d   :  { %v1863_v54 = vmul.f32 -1.442695, %v2952_v47 }
 0x36e   :  { %v1864_v39 = vmul.f32 -1.442695, %v2953_v58 }
 0x36f   :  { %3012 = vpow2.f32 %v1863_v54 }
 0x370   :  { %3014 = vpow2.f32 %v1864_v39 }
 0x379   :  { %v3013_v44 = vpop.eup %3012 }
 0x37a   :  { %v903_v60 = vadd.f32 1.0, %v3013_v44  ;;  %v3015_v63 = vpop.eup %3014 }
 0x37b   :  { %v910_v8 = vadd.f32 1.0, %v3015_v63 }
 0x37c   :  { %3016 = vrcp.f32 %v903_v60 }
 0x386   :  { %v3017_v5 = vpop.eup %3016 }
 0x387   :  { %v914_v6 = vmul.f32 %v3017_v5, %v913_v3 }
 0x389   :  { %v915_v7 = vadd.f32 %v914_v6, %v3455_v50 }
 0x38b   :  { %3018 = vtanh.f32 %v915_v7 }
 0x38c   :  { %3020 = vrcp.f32 %v910_v8 }
 0x395   :  { %v3019_v12 = vpop.eup %3018 }
 0x396   :  { %v917_v14 = vsub.f32 %v757_v38, %v3019_v12  ;;  %v3021_v16 = vpop.eup %3020 }
 0x398   :  { %v918_v19 = vmul.f32 %v3021_v16, %v917_v14 }
 0x39a   :  { %v919_v21 = vadd.f32 %v3019_v12, %v918_v19 }
 0x39c   :  { %985 = vmatmul.mubr.f32.vlgmr.msra.gmra.mrb[6].mxu0 %v919_v21  ;;  %2235 = vmatmul.mubr.f32.vlgmr.msra.gmra.mrb[14].mxu1 %v919_v21 }
 0x39d   :  { %2703 = vmatpush1.bf16.msra.mxu0 %v3319_v17  ;;  %2734 = vmatpush3.bf16.msra.mxu1 %v3340_v41 }
 0x39e   :  { %2705 = vmatprep.subr.bf16.mxu0 %v3322_v18  ;;  %2735 = vmatprep.subr.bf16.mxu1 %v3203_v40 }
 0x39f   :  { %1146 = vmatprep.mubr.f32.mxu0 %v3202_v0  ;;  %2269 = vmatprep.mubr.msk.f32.mxu1 %vm3204_vm0, %v3202_v0 }
 0x3a1   :  { %2707 = vmatpush1.bf16.msra.mxu0 %v3327_v25  ;;  %2737 = vmatpush3.bf16.msra.mxu1 %v3350_v51 }
 0x3a2   :  { %2709 = vmatprep.subr.bf16.mxu0 %v3330_v26  ;;  %2738 = vmatprep.subr.bf16.mxu1 %v3203_v40 }
 0x3a5   :  { %2711 = vmatpush1.bf16.msra.mxu0 %v3334_v34  ;;  %2740 = vmatpush3.bf16.msra.mxu1 %v3361_v61 }
 0x3a6   :  { %2713 = vmatprep.subr.bf16.mxu0 %v3337_v35  ;;  %2741 = vmatprep.subr.bf16.mxu1 %v3203_v40 }
 0x3a9   :  { %2715 = vmatpush1.bf16.msra.mxu0 %v3344_v45  ;;  %2743 = vmatpush3.bf16.msra.mxu1 %v3372_v10 }
 0x3aa   :  { %2717 = vmatprep.subr.bf16.mxu0 %v3347_v46  ;;  %2744 = vmatprep.subr.bf16.mxu1 %v3203_v40 }
 0x3ad   :  { %2719 = vmatpush1.bf16.msra.mxu0 %v3355_v55  ;;  %2746 = vmatpush3.bf16.msra.mxu1 %v3383_v20 }
 0x3ae   :  { %2721 = vmatprep.subr.bf16.mxu0 %v3358_v56  ;;  %2747 = vmatprep.subr.bf16.mxu1 %v3203_v40 }
 0x3b1   :  { %2723 = vmatpush1.bf16.msra.mxu0 %v3366_v2  ;;  %2749 = vmatpush3.bf16.msra.mxu1 %v3394_v24 }
 0x3b2   :  { %2725 = vmatprep.subr.bf16.mxu0 %v3369_v4  ;;  %2750 = vmatprep.subr.bf16.mxu1 %v3203_v40 }
 0x3b5   :  { %2727 = vmatpush1.bf16.msra.mxu0 %v3377_v13  ;;  %2752 = vmatpush3.bf16.msra.mxu1 %v3401_v29 }
 0x3b6   :  { %2729 = vmatprep.subr.bf16.mxu0 %v3380_v15  ;;  %2753 = vmatprep.subr.bf16.mxu1 %v3203_v40 }
 0x3b9   :  { %2731 = vmatpush1.bf16.msra.mxu0 %v3390_v23  ;;  %2755 = vmatpush3.bf16.msra.mxu1 %v3409_v32 }
 0x3ba   :  { %2757 = vmatprep.subr.bf16.mxu0 %v3317_v9  ;;  %2788 = vmatprep.subr.bf16.mxu1 %v3203_v40 }
 0x46f   :  { %v986_v50 = vpop.f32.mrb[6].mxu0  ;;  %v1057_v22 = vpop.f32.mrb[14].mxu1 }
 0x470   :  { %v2954_v28 = vadd.f32 %v986_v50, %v3465_v1  ;;  %v988_v30 = vpop.f32.mrb[7].mxu0  ;;  %v2236_v31 = vpop.f32.mrb[15].mxu1  ;;  %v1075_v49 = vadd.f32 %v3474_v27, %v1057_v22 }
 0x471   :  { %v2955_v37 = vadd.f32 %v988_v30, %v3468_v11 }
 0x472   :  { %v1865_v36 = vmul.f32 -1.442695, %v2954_v28 }
 0x473   :  { %v1866_v38 = vmul.f32 -1.442695, %v2955_v37 }
 0x474   :  { %3022 = vpow2.f32 %v1865_v36 }
 0x475   :  { %3024 = vpow2.f32 %v1866_v38 }
 0x47e   :  { %v3023_v43 = vpop.eup %3022 }
 0x47f   :  { %v1065_v42 = vadd.f32 1.0, %v3023_v43  ;;  %v3025_v47 = vpop.eup %3024 }
 0x480   :  { %v1072_v39 = vadd.f32 1.0, %v3025_v47 }
 0x481   :  { %3026 = vrcp.f32 %v1065_v42 }
 0x48b   :  { %v3027_v52 = vpop.eup %3026 }
 0x48c   :  { %v1076_v54 = vmul.f32 %v3027_v52, %v1075_v49 }
 0x48e   :  { %v1077_v58 = vadd.f32 %v1076_v54, %v3453_v48 }
 0x490   :  { %3028 = vtanh.f32 %v1077_v58 }
 0x491   :  { %3030 = vrcp.f32 %v1072_v39 }
 0x49a   :  { %v3029_v44 = vpop.eup %3028 }
 0x49b   :  { %v1079_v60 = vsub.f32 %v919_v21, %v3029_v44  ;;  %v3031_v63 = vpop.eup %3030 }
 0x49d   :  { %v1080_v3 = vmul.f32 %v3031_v63, %v1079_v60 }
 0x49f   :  { %v1081_v5 = vadd.f32 %v3029_v44, %v1080_v3 }
 0x4a1   :  { %1147 = vmatmul.mubr.f32.vlgmr.msra.gmra.mrb[8].mxu0 %v1081_v5  ;;  %2270 = vmatmul.mubr.f32.vlgmr.msra.gmra.mrb[16].mxu1 %v1081_v5 }
 0x4a2   :  { %2759 = vmatpush1.bf16.msra.mxu0 %v3319_v17  ;;  %2790 = vmatpush3.bf16.msra.mxu1 %v3340_v41 }
 0x4a3   :  { %2761 = vmatprep.subr.bf16.mxu0 %v3322_v18  ;;  %2791 = vmatprep.subr.bf16.mxu1 %v3203_v40 }
 0x4a4   :  { %1308 = vmatprep.mubr.f32.mxu0 %v3202_v0  ;;  %2304 = vmatprep.mubr.msk.f32.mxu1 %vm3204_vm0, %v3202_v0 }
 0x4a6   :  { %2763 = vmatpush1.bf16.msra.mxu0 %v3327_v25  ;;  %2793 = vmatpush3.bf16.msra.mxu1 %v3350_v51 }
 0x4a7   :  { %2765 = vmatprep.subr.bf16.mxu0 %v3330_v26  ;;  %2794 = vmatprep.subr.bf16.mxu1 %v3203_v40 }
 0x4aa   :  { %2767 = vmatpush1.bf16.msra.mxu0 %v3334_v34  ;;  %2796 = vmatpush3.bf16.msra.mxu1 %v3361_v61 }
 0x4ab   :  { %2769 = vmatprep.subr.bf16.mxu0 %v3337_v35  ;;  %2797 = vmatprep.subr.bf16.mxu1 %v3203_v40 }
 0x4ae   :  { %2771 = vmatpush1.bf16.msra.mxu0 %v3344_v45  ;;  %2799 = vmatpush3.bf16.msra.mxu1 %v3372_v10 }
 0x4af   :  { %2773 = vmatprep.subr.bf16.mxu0 %v3347_v46  ;;  %2800 = vmatprep.subr.bf16.mxu1 %v3203_v40 }
 0x4b2   :  { %2775 = vmatpush1.bf16.msra.mxu0 %v3355_v55  ;;  %2802 = vmatpush3.bf16.msra.mxu1 %v3383_v20 }
 0x4b3   :  { %2777 = vmatprep.subr.bf16.mxu0 %v3358_v56  ;;  %2803 = vmatprep.subr.bf16.mxu1 %v3203_v40 }
 0x4b6   :  { %2779 = vmatpush1.bf16.msra.mxu0 %v3366_v2  ;;  %2805 = vmatpush3.bf16.msra.mxu1 %v3394_v24 }
 0x4b7   :  { %2781 = vmatprep.subr.bf16.mxu0 %v3369_v4  ;;  %2806 = vmatprep.subr.bf16.mxu1 %v3203_v40 }
 0x4ba   :  { %2783 = vmatpush1.bf16.msra.mxu0 %v3377_v13  ;;  %2808 = vmatpush3.bf16.msra.mxu1 %v3401_v29 }
 0x4bb   :  { %2785 = vmatprep.subr.bf16.mxu0 %v3380_v15  ;;  %2809 = vmatprep.subr.bf16.mxu1 %v3203_v40 }
 0x4be   :  { %2787 = vmatpush1.bf16.msra.mxu0 %v3390_v23  ;;  %2811 = vmatpush3.bf16.msra.mxu1 %v3409_v32 }
 0x4bf   :  { %2813 = vmatprep.subr.bf16.mxu0 %v3317_v9  ;;  %2844 = vmatprep.subr.bf16.mxu1 %v3203_v40 }
 0x574   :  { %v1148_v48 = vpop.f32.mrb[8].mxu0  ;;  %v1219_v6 = vpop.f32.mrb[16].mxu1 }
 0x575   :  { %v2956_v7 = vadd.f32 %v1148_v48, %v3465_v1  ;;  %v1150_v8 = vpop.f32.mrb[9].mxu0  ;;  %v2271_v12 = vpop.f32.mrb[17].mxu1  ;;  %v1237_v28 = vadd.f32 %v3474_v27, %v1219_v6 }
 0x576   :  { %v2957_v16 = vadd.f32 %v1150_v8, %v3468_v11 }
 0x577   :  { %v1867_v14 = vmul.f32 -1.442695, %v2956_v7 }
 0x578   :  { %v1868_v19 = vmul.f32 -1.442695, %v2957_v16 }
 0x579   :  { %3032 = vpow2.f32 %v1867_v14 }
 0x57a   :  { %3034 = vpow2.f32 %v1868_v19 }
 0x583   :  { %v3033_v21 = vpop.eup %3032 }
 0x584   :  { %v1227_v50 = vadd.f32 1.0, %v3033_v21  ;;  %v3035_v22 = vpop.eup %3034 }
 0x585   :  { %v1234_v37 = vadd.f32 1.0, %v3035_v22  ;;  %v1737_v22 = vld [vmem:[#allocation9 + $0x18] sm:$0xff] }
 0x586   :  { %3036 = vrcp.f32 %v1227_v50 }
 0x590   :  { %v3037_v30 = vpop.eup %3036 }
 0x591   :  { %v1238_v31 = vmul.f32 %v3037_v30, %v1237_v28  ;;  %v1738_v30 = vld [vmem:[#allocation9 + $0x20] sm:$0xff] }
 0x593   :  { %v1239_v36 = vadd.f32 %v1238_v31, %v3459_v57  ;;  %v1739_v31 = vld [vmem:[#allocation9 + $0x28] sm:$0xff] }
 0x595   :  { %3038 = vtanh.f32 %v1239_v36  ;;  %v2931_v36 = vpack.c.bf16 %v1739_v31, %v1738_v30 }
 0x596   :  { %3040 = vrcp.f32 %v1234_v37  ;;  %v1740_v37 = vld [vmem:[#allocation9 + $0x30] sm:$0xff] }
 0x59f   :  { %v3039_v38 = vpop.eup %3038 }
 0x5a0   :  { %v1241_v43 = vsub.f32 %v1081_v5, %v3039_v38  ;;  %v3041_v42 = vpop.eup %3040 }
 0x5a2   :  { %v1242_v47 = vmul.f32 %v3041_v42, %v1241_v43  ;;  %v1742_v43 = vld [vmem:[#allocation9 + $0x40] sm:$0xff]  ;;  %v1743_v42 = vld [vmem:[#allocation9 + $0x48] sm:$0xff] }
 0x5a4   :  { %v1243_v49 = vadd.f32 %v3039_v38, %v1242_v47  ;;  %v2937_v47 = vpack.c.bf16 %v1743_v42, %v1742_v43 }
 0x5a6   :  { %1309 = vmatmul.mubr.f32.vlgmr.msra.gmra.mrb[10].mxu0 %v1243_v49  ;;  %2305 = vmatmul.mubr.f32.vlgmr.msra.gmra.mrb[18].mxu1 %v1243_v49 }
 0x5a7   :  { %2815 = vmatpush1.bf16.msra.mxu0 %v3319_v17  ;;  %2846 = vmatpush3.bf16.msra.mxu1 %v3340_v41 }
 0x5a8   :  { %2817 = vmatprep.subr.bf16.mxu0 %v3322_v18  ;;  %2847 = vmatprep.subr.bf16.mxu1 %v3203_v40 }
 0x5a9   :  { %1470 = vmatprep.mubr.f32.mxu0 %v3202_v0  ;;  %2339 = vmatprep.mubr.msk.f32.mxu1 %vm3204_vm0, %v3202_v0 }
 0x5ab   :  { %2819 = vmatpush1.bf16.msra.mxu0 %v3327_v25  ;;  %2849 = vmatpush3.bf16.msra.mxu1 %v3350_v51 }
 0x5ac   :  { %2821 = vmatprep.subr.bf16.mxu0 %v3330_v26  ;;  %2850 = vmatprep.subr.bf16.mxu1 %v3203_v40 }
 0x5af   :  { %2823 = vmatpush1.bf16.msra.mxu0 %v3334_v34  ;;  %2852 = vmatpush3.bf16.msra.mxu1 %v3361_v61 }
 0x5b0   :  { %2825 = vmatprep.subr.bf16.mxu0 %v3337_v35  ;;  %2853 = vmatprep.subr.bf16.mxu1 %v3203_v40 }
 0x5b3   :  { %2827 = vmatpush1.bf16.msra.mxu0 %v3344_v45  ;;  %2855 = vmatpush3.bf16.msra.mxu1 %v3372_v10 }
 0x5b4   :  { %2829 = vmatprep.subr.bf16.mxu0 %v3347_v46  ;;  %2856 = vmatprep.subr.bf16.mxu1 %v3203_v40 }
 0x5b7   :  { %2831 = vmatpush1.bf16.msra.mxu0 %v3355_v55  ;;  %2858 = vmatpush3.bf16.msra.mxu1 %v3383_v20 }
 0x5b8   :  { %2833 = vmatprep.subr.bf16.mxu0 %v3358_v56  ;;  %2859 = vmatprep.subr.bf16.mxu1 %v3203_v40 }
 0x5bb   :  { %2835 = vmatpush1.bf16.msra.mxu0 %v3366_v2  ;;  %2861 = vmatpush3.bf16.msra.mxu1 %v3394_v24 }
 0x5bc   :  { %2837 = vmatprep.subr.bf16.mxu0 %v3369_v4  ;;  %2862 = vmatprep.subr.bf16.mxu1 %v3203_v40 }
 0x5bf   :  { %2839 = vmatpush1.bf16.msra.mxu0 %v3377_v13  ;;  %2864 = vmatpush3.bf16.msra.mxu1 %v3401_v29 }
 0x5c0   :  { %2841 = vmatprep.subr.bf16.mxu0 %v3380_v15  ;;  %2865 = vmatprep.subr.bf16.mxu1 %v3203_v40 }
 0x5c3   :  { %2843 = vmatpush1.bf16.msra.mxu0 %v3390_v23  ;;  %2867 = vmatpush3.bf16.msra.mxu1 %v3409_v32 }
 0x5c4   :  { %2869 = vmatprep.subr.bf16.mxu0 %v3317_v9  ;;  %2900 = vmatprep.subr.bf16.mxu1 %v3203_v40 }
 0x679   :  { %v1310_v57 = vpop.f32.mrb[10].mxu0  ;;  %v1381_v52 = vpop.f32.mrb[18].mxu1 }
 0x67a   :  { %v2958_v54 = vadd.f32 %v1310_v57, %v3465_v1  ;;  %v1312_v58 = vpop.f32.mrb[11].mxu0  ;;  %v2306_v39 = vpop.f32.mrb[19].mxu1  ;;  %v1399_v9 = vadd.f32 %v3474_v27, %v1381_v52  ;;  %v1745_v57 = vld [vmem:[#allocation9 + $0x58] sm:$0xff] }
 0x67b   :  { %v2959_v60 = vadd.f32 %v1312_v58, %v3468_v11  ;;  %v1747_v58 = vld [vmem:[#allocation9 + $0x68] sm:$0xff] }
 0x67c   :  { %v1869_v44 = vmul.f32 -1.442695, %v2958_v54  ;;  %v1746_v54 = vld [vmem:[#allocation9 + $0x60] sm:$0xff] }
 0x67d   :  { %v1870_v63 = vmul.f32 -1.442695, %v2959_v60  ;;  %v2943_v39 = vpack.c.bf16 %v1747_v58, %v1746_v54  ;;  %v1749_v60 = vld [vmem:[#allocation9 + $0x78] sm:$0xff] }
 0x67e   :  { %3042 = vpow2.f32 %v1869_v44  ;;  %v1748_v44 = vld [vmem:[#allocation9 + $0x70] sm:$0xff] }
 0x67f   :  { %3044 = vpow2.f32 %v1870_v63  ;;  %v2946_v63 = vpack.c.bf16 %v1749_v60, %v1748_v44 }
 0x688   :  { %v3043_v3 = vpop.eup %3042 }
 0x689   :  { %v1389_v5 = vadd.f32 1.0, %v3043_v3  ;;  %v3045_v48 = vpop.eup %3044 }
 0x68a   :  { %v1396_v12 = vadd.f32 1.0, %v3045_v48 }
 0x68b   :  { %3046 = vrcp.f32 %v1389_v5 }
 0x695   :  { %v3047_v6 = vpop.eup %3046 }
 0x696   :  { %v1400_v7 = vmul.f32 %v3047_v6, %v1399_v9 }
 0x698   :  { %v1401_v8 = vadd.f32 %v1400_v7, %v3457_v53 }
 0x69a   :  { %3048 = vtanh.f32 %v1401_v8 }
 0x69b   :  { %3050 = vrcp.f32 %v1396_v12 }
 0x6a4   :  { %v3049_v14 = vpop.eup %3048 }
 0x6a5   :  { %v1403_v16 = vsub.f32 %v1243_v49, %v3049_v14  ;;  %v3051_v19 = vpop.eup %3050  ;;  %v1744_v49 = vld [vmem:[#allocation9 + $0x50] sm:$0xff] }
 0x6a6   :  { %v2940_v52 = vpack.c.bf16 %v1745_v57, %v1744_v49 }
 0x6a7   :  { %v1404_v21 = vmul.f32 %v3051_v19, %v1403_v16 }
 0x6a9   :  { %v1405_v50 = vadd.f32 %v3049_v14, %v1404_v21 }
 0x6ab   :  { %1471 = vmatmul.mubr.f32.vlgmr.msra.gmra.mrb[12].mxu0 %v1405_v50  ;;  %2340 = vmatmul.mubr.f32.vlgmr.msra.gmra.mrb[20].mxu1 %v1405_v50 }
 0x6ac   :  { %2871 = vmatpush1.bf16.msra.mxu0 %v3319_v17  ;;  %2902 = vmatpush3.bf16.msra.mxu1 %v3340_v41 }
 0x6ad   :  { %2873 = vmatprep.subr.bf16.mxu0 %v3322_v18  ;;  %2903 = vmatprep.subr.bf16.mxu1 %v3203_v40 }
 0x6ae   :  { %1632 = vmatprep.mubr.f32.mxu0 %v3202_v0  ;;  %2374 = vmatprep.mubr.msk.f32.mxu1 %vm3204_vm0, %v3202_v0 }
 0x6b0   :  { %2875 = vmatpush1.bf16.msra.mxu0 %v3327_v25  ;;  %2905 = vmatpush3.bf16.msra.mxu1 %v3350_v51 }
 0x6b1   :  { %2877 = vmatprep.subr.bf16.mxu0 %v3330_v26  ;;  %2906 = vmatprep.subr.bf16.mxu1 %v3203_v40 }
 0x6b4   :  { %2879 = vmatpush1.bf16.msra.mxu0 %v3334_v34  ;;  %2908 = vmatpush3.bf16.msra.mxu1 %v3361_v61 }
 0x6b5   :  { %2881 = vmatprep.subr.bf16.mxu0 %v3337_v35  ;;  %2909 = vmatprep.subr.bf16.mxu1 %v3203_v40 }
 0x6b8   :  { %2883 = vmatpush1.bf16.msra.mxu0 %v3344_v45  ;;  %2911 = vmatpush3.bf16.msra.mxu1 %v3372_v10 }
 0x6b9   :  { %2885 = vmatprep.subr.bf16.mxu0 %v3347_v46  ;;  %2912 = vmatprep.subr.bf16.mxu1 %v3203_v40 }
 0x6bc   :  { %2887 = vmatpush1.bf16.msra.mxu0 %v3355_v55  ;;  %2914 = vmatpush3.bf16.msra.mxu1 %v3383_v20 }
 0x6bd   :  { %2889 = vmatprep.subr.bf16.mxu0 %v3358_v56  ;;  %2915 = vmatprep.subr.bf16.mxu1 %v3203_v40 }
 0x6c0   :  { %2891 = vmatpush1.bf16.msra.mxu0 %v3366_v2  ;;  %2917 = vmatpush3.bf16.msra.mxu1 %v3394_v24 }
 0x6c1   :  { %2893 = vmatprep.subr.bf16.mxu0 %v3369_v4  ;;  %2918 = vmatprep.subr.bf16.mxu1 %v3203_v40 }
 0x6c4   :  { %2895 = vmatpush1.bf16.msra.mxu0 %v3377_v13  ;;  %2920 = vmatpush3.bf16.msra.mxu1 %v3401_v29  ;;  %v1734_v29 = vld [vmem:[#allocation9] sm:$0xff] }
 0x6c5   :  { %2897 = vmatprep.subr.bf16.mxu0 %v3380_v15  ;;  %2921 = vmatprep.subr.bf16.mxu1 %v3203_v40 }
 0x6c8   :  { %2899 = vmatpush1.bf16.msra.mxu0 %v3390_v23  ;;  %2923 = vmatpush3.bf16.msra.mxu1 %v3409_v32  ;;  %v1735_v32 = vld [vmem:[#allocation9 + $0x8] sm:$0xff] }
 0x6c9   :  { %2924 = vmatprep.subr.bf16.mxu0 %v3203_v40  ;;  %v2925_v53 = vpack.c.bf16 %v1735_v32, %v1734_v29 }
 0x77e   :  { %v1472_v17 = vpop.f32.mrb[12].mxu0  ;;  %v1543_v18 = vpop.f32.mrb[20].mxu1 }
 0x77f   :  { %v2960_v25 = vadd.f32 %v1472_v17, %v3465_v1  ;;  %v1474_v26 = vpop.f32.mrb[13].mxu0  ;;  %v2341_v34 = vpop.f32.mrb[21].mxu1  ;;  %v1561_v56 = vadd.f32 %v3474_v27, %v1543_v18 }
 0x780   :  { %v2961_v41 = vadd.f32 %v1474_v26, %v3468_v11 }
 0x781   :  { %v1871_v35 = vmul.f32 -1.442695, %v2960_v25 }
 0x782   :  { %v1872_v45 = vmul.f32 -1.442695, %v2961_v41 }
 0x783   :  { %3052 = vpow2.f32 %v1871_v35  ;;  %v1828_v35 = vand.u32 127, %v145_v33 }
 0x784   :  { %3054 = vpow2.f32 %v1872_v45 }
 0x785   :  { %vm1829_vm1 = vcmp.lt.s32.totalorder %v1828_v35, 4 }
 0x78d   :  { %v3053_v46 = vpop.eup %3052 }
 0x78e   :  { %v1551_v51 = vadd.f32 1.0, %v3053_v46  ;;  %v3055_v55 = vpop.eup %3054 }
 0x78f   :  { %v1558_v10 = vadd.f32 1.0, %v3055_v55 }
 0x790   :  { %3056 = vrcp.f32 %v1551_v51 }
 0x79a   :  { %v3057_v61 = vpop.eup %3056 }
 0x79b   :  { %v1562_v2 = vmul.f32 %v3057_v61, %v1561_v56 }
 0x79d   :  { %v1563_v4 = vadd.f32 %v1562_v2, %v3463_v62  ;;  %v1736_v62 = vld [vmem:[#allocation9 + $0x10] sm:$0xff] }
 0x79e   :  { %v2928_v28 = vpack.c.bf16 %v1737_v22, %v1736_v62 }
 0x79f   :  { %3058 = vtanh.f32 %v1563_v4 }
 0x7a0   :  { %3060 = vrcp.f32 %v1558_v10 }
 0x7a9   :  { %v3059_v13 = vpop.eup %3058 }
 0x7aa   :  { %v1565_v15 = vsub.f32 %v1405_v50, %v3059_v13  ;;  %v3061_v20 = vpop.eup %3060 }
 0x7ac   :  { %v1566_v23 = vmul.f32 %v3061_v20, %v1565_v15 }
 0x7ae   :  { %v3710_v24 = vadd.f32 %v3059_v13, %v1566_v23 }
 0x7b0   :  { %1633 = vmatmul.mubr.f32.vlgmr.msra.gmra.mrb[14].mxu0 %v3710_v24  ;;  %2375 = vmatmul.mubr.f32.vlgmr.msra.gmra.mrb[22].mxu1 %v3710_v24 }
 0x7b1   :  { %2409 = vmatprep.mubr.msk.f32.mxu0 %vm3204_vm0, %v3202_v0  ;;  %2926 = vmatpush3.bf16.msra.mxu0 %v2925_v53  ;;  %v1741_v0 = vld [vmem:[#allocation9 + $0x38] sm:$0xff] }
 0x7b2   :  { %2927 = vmatprep.subr.bf16.mxu0 %v3203_v40  ;;  %v2934_v38 = vpack.c.bf16 %v1741_v0, %v1740_v37 }
 0x7b5   :  { %2929 = vmatpush3.bf16.msra.mxu0 %v2928_v28 }
 0x7b6   :  { %2930 = vmatprep.subr.bf16.mxu0 %v3203_v40 }
 0x7b9   :  { %2932 = vmatpush3.bf16.msra.mxu0 %v2931_v36 }
 0x7ba   :  { %2933 = vmatprep.subr.bf16.mxu0 %v3203_v40 }
 0x7bd   :  { %2935 = vmatpush3.bf16.msra.mxu0 %v2934_v38 }
 0x7be   :  { %2936 = vmatprep.subr.bf16.mxu0 %v3203_v40 }
 0x7c1   :  { %2938 = vmatpush3.bf16.msra.mxu0 %v2937_v47 }
 0x7c2   :  { %2939 = vmatprep.subr.bf16.mxu0 %v3203_v40 }
 0x7c5   :  { %2941 = vmatpush3.bf16.msra.mxu0 %v2940_v52 }
 0x7c6   :  { %2942 = vmatprep.subr.bf16.mxu0 %v3203_v40 }
 0x7c9   :  { %2944 = vmatpush3.bf16.msra.mxu0 %v2943_v39 }
 0x7ca   :  { %2945 = vmatprep.subr.bf16.mxu0 %v3203_v40 }
 0x7cd   :  { %2947 = vmatpush3.bf16.msra.mxu0 %v2946_v63 }
 0x883   :  { %v1634_v3 = vpop.f32.mrb[14].mxu0  ;;  %v1705_v5 = vpop.f32.mrb[22].mxu1 }
 0x884   :  { %v2962_v48 = vadd.f32 %v1634_v3, %v3465_v1  ;;  %v1636_v9 = vpop.f32.mrb[15].mxu0  ;;  %v2376_v6 = vpop.f32.mrb[23].mxu1  ;;  %v1723_v21 = vadd.f32 %v3474_v27, %v1705_v5  ;;  %v1875_v27 = vld [vmem:[%s3750_s6] ss:$0 sm:$0xff]  ;;  %s3164_s6 = scalar_lea.vmem %s1848_s30, 128 }
 0x885   :  { %v2963_v8 = vadd.f32 %v1636_v9, %v3468_v11  ;;  %p3165_p4 = scmp.ne.s32.totalorder %s1848_s30, %s3164_s6  ;;  %p3170_p6 = scmp.lt.s32.totalorder %s3164_s6, %s3164_s6 }
 0x886   :  { %v1873_v7 = vmul.f32 -1.442695, %v2962_v48 }
 0x887   :  { %v1874_v12 = vmul.f32 -1.442695, %v2963_v8  ;;  %p3171_p7 = por %p3170_p6, %p3169_p5 }
 0x888   :  { %3062 = vpow2.f32 %v1873_v7 }
 0x889   :  { %3064 = vpow2.f32 %v1874_v12  ;;  %p3172_p8 = pnand %p3171_p7, %p3165_p4 }
 0x892   :  { %v3063_v14 = vpop.eup %3062 }
 0x893   :  { %v1713_v16 = vadd.f32 1.0, %v3063_v14  ;;  %v3065_v19 = vpop.eup %3064 }
 0x894   :  { %v1720_v18 = vadd.f32 1.0, %v3065_v19 }
 0x895   :  { %3066 = vrcp.f32 %v1713_v16 }
 0x89f   :  { %v3067_v40 = vpop.eup %3066 }
 0x8a0   :  { %v1724_v50 = vmul.f32 %v3067_v40, %v1723_v21 }
 0x8a2   :  { %v1725_v17 = vadd.f32 %v1724_v50, %v3461_v59 }
 0x8a4   :  { %3068 = vtanh.f32 %v1725_v17 }
 0x8a5   :  { %3070 = vrcp.f32 %v1720_v18 }
 0x8ae   :  { %v3069_v1 = vpop.eup %3068 }
 0x8af   :  { %v1727_v25 = vsub.f32 %v3710_v24, %v3069_v1  ;;  %v3071_v26 = vpop.eup %3070 }
 0x8b1   :  { %v1728_v11 = vmul.f32 %v3071_v26, %v1727_v25 }
 0x8b3   :  { %v1729_v34 = vadd.f32 %v3069_v1, %v1728_v11 }
 0x8b5   :  { %2410 = vmatmul.mubr.f32.vlgmr.msra.gmra.mrb[16].mxu0 %v1729_v34 }
 0x988   :  { %v1823_v41 = vpop.f32.mrb[16].mxu0 }
 0x989   :  { %v1824_v45 = vadd.f32 %v1875_v27, %v1823_v41  ;;  %v2411_v59 = vpop.f32.mrb[17].mxu0 }
 0x98b   :  { %v1830_v46 = vsel %vm1829_vm1, %v1824_v45, -1e+30 }
 0x98c   :  { %1831 = vmax.xlane.f32.xlu0 %v1830_v46 }
 0xa19   :  { %v1832_v51 = vpop.xlane.xlu0 %1831 }
 0xa1a   :  { %v1833_v55 = vsub.f32 %v1830_v46, %v1832_v51 }
 0xa1c   :  { %v1834_v56 = vmul.f32 1.442695, %v1833_v55 }
 0xa1e   :  { %3072 = vpow2.f32 %v1834_v56 }
 0xa28   :  { %v3073_v61 = vpop.eup %3072 }
 0xa29   :  { %1836 = vadd.xlane.f32.xlu0 %v3073_v61 }
 0xab6   :  { %v1837_v2 = vpop.xlane.xlu0 %1836 }
 0xab7   :  { %3074 = vrcp.f32 %v1837_v2 }
 0xac1   :  { %v3075_v33 = vpop.eup %3074 }
 0xac2   :  { %v1839_v4 = vmul.f32 %v3075_v33, %v3073_v61 }
 0xac4   :  { %1840 = vst [vmem:[#allocation11] sm:$0xff] %v1839_v4 }
 0xac5   :  { %3175 = shalt.err (!%p3172_p8)
}
 0xac6   :  { %s3176_s10 = scalar_lea.hbm %s3751_s7, 128 }
 0xac7   :  { %p3177_p9 = scmp.ne.s32.totalorder %s3751_s7, %s3176_s10  ;;  %p3180_p10 = scmp.lt.u32.totalorder %s3176_s10, %s3751_s7 }
 0xac9   :  { %p3182_p11 = pnand %p3180_p10, %p3177_p9 }
 0xacb   :  { %3185 = shalt.err (!%p3182_p11)
}
 0xacc   :  { %1850 = dma.vmem_to_hbm [thread:$0]  %s1848_s30, 128, %s3751_s7, [#allocation5]  }
 0xacd   :  { %3192 = dma.done.wait [#allocation5], 128  }
 0xace   :  { %3193 = vsyncadd [#allocation5], 4294967168 }
 0xacf   :  { %1854 = vsyncpa [#allocation4], 1 }
 0xad0   :  { %1855 = vsyncpa [#allocation7], 1 }
 0xad1   :  { %1856 = vsyncpa [#allocation10], 1 }
 0xad2   :  { %1857 = vsyncpa [#allocation5], 1 }

</bundles_post_ra>
